<compile_context>
chip_gen: v7x
topology: tpu7x:2x2x1
jax: 0.10.0
libtpu: 0.0.40
codegen_flags: <defaults>
</compile_context>

<pallas_src>
import jax
import jax.numpy as jnp
from jax import lax
from jax.experimental import pallas as pl
from jax.experimental.pallas import tpu as pltpu

PAD = 2  # total halo rows per side for the two chained 3x3 stages


def _relu6(v):
    return jnp.clip(v, 0.0, 6.0)


def _largest_divisor_leq(n, cap):
    cap = max(1, min(n, cap))
    for d in range(cap, 0, -1):
        if n % d == 0:
            return d
    return 1


def mobilev1_residual_block(x_nhwc, params, *, rows_per_step=512,
                            matmul_dtype=jnp.bfloat16):
    """Fused MobileV1 residual block. x_nhwc: (N, H, W, C) float32."""
    N, H, W, C = x_nhwc.shape
    WC = W * C
    assert WC % 128 == 0, "lane-dense layout needs W*C to be a multiple of 128"

    f32 = jnp.float32
    x = x_nhwc.reshape(N, H, WC).astype(f32)

    # ---- grid sizing: NB whole zero-padded images per step, no overlap ----
    Hp = ((H + 2 * PAD + 7) // 8) * 8          # rows per padded image, 8-aligned
    NB = _largest_divisor_leq(N, max(1, rows_per_step // Hp))
    ROWS = NB * Hp                             # rows (matmul M) per grid step
    G = N // NB                                # grid steps (v7x likes G >= 2)

    # ---- host-side weight prep: fold BN, tile over W, fold W-border masks ----
    def vec(p):
        return jnp.asarray(p, f32).reshape(-1)

    s1, b1 = vec(params["s1"]), vec(params["b1"])
    s2, b2 = vec(params["s2"]), vec(params["b2"])
    s3, b3 = vec(params["s3"]), vec(params["b3"])
    s4, b4 = vec(params["s4"]), vec(params["b4"])

    lane = jnp.arange(WC)
    left_ok = (lane >= C).astype(f32)          # lanes valid after a (w-1) shift
    right_ok = (lane < WC - C).astype(f32)     # lanes valid after a (w+1) shift
    ones = jnp.ones((WC,), f32)

    def dw_taps(dw, scale):
        # depthwise taps * dw-BN scale, tiled over W -> (9, WC); lane l holds ch l%C
        t = jnp.tile((jnp.asarray(dw, f32) * scale.reshape(1, 1, -1)).reshape(9, C),
                     (1, W))
        # fold the W-border zero-padding into the taps (dj=0 -> w-1, dj=2 -> w+1)
        m = jnp.stack([left_ok if (k % 3) == 0 else
                       (right_ok if (k % 3) == 2 else ones) for k in range(9)])
        return t * m

    dwt1 = dw_taps(params["dw1"], s1)
    dwt2 = dw_taps(params["dw2"], s3)

    # 1x1 conv (pw-BN scale folded into columns) as block-diagonal (WC, WC)
    bd1 = jnp.kron(jnp.eye(W, dtype=f32),
                   jnp.asarray(params["pw1"], f32) * s2[None, :]).astype(matmul_dtype)
    bd2 = jnp.kron(jnp.eye(W, dtype=f32),
                   jnp.asarray(params["pw2"], f32) * s4[None, :]).astype(matmul_dtype)
    biases = jnp.stack([jnp.tile(b, W) for b in (b1, b2, b3, b4)]).astype(f32)  # (4,WC)

    # ---- host-side: stack zero-padded images into one tall (N*Hp, WC) slab ----
    xp = jnp.zeros((N, Hp, WC), f32).at[:, PAD:PAD + H, :].set(x)
    x_tall = xp.reshape(N * Hp, WC)

    # per-segment row validity (0 at halo / alignment-pad rows), tiled over NB
    seg_valid = ((jnp.arange(Hp) >= PAD) & (jnp.arange(Hp) < PAD + H)).astype(f32)
    row_mask = jnp.tile(seg_valid, NB).reshape(ROWS, 1)

    # ---- the kernel ----------------------------------------------------------
    def kernel(xs_ref, dwt1_ref, bd1_ref, dwt2_ref, bd2_ref, bias_ref, mask_ref,
               out_ref):
        xv = xs_ref[...]                                   # (ROWS, WC) f32

        def depthwise3x3(v, dwt_ref_):
            # 9 roll-shifted copies x pre-masked taps; no selects, no iota.
            acc = None
            for di in range(3):
                dh = di - 1
                vh = v if dh == 0 else pltpu.roll(v, (-dh) % ROWS, axis=0)
                for dj in range(3):
                    dwj = dj - 1
                    vs = vh if dwj == 0 else pltpu.roll(vh, (-dwj * C) % WC, axis=1)
                    term = vs * dwt_ref_[di * 3 + dj]      # (WC,) broadcast
                    acc = term if acc is None else acc + term
            return acc

        # stage 1: dw3x3 (+BN folded) + bias + ReLU6, then 1x1 (+BN) + bias + ReLU6
        y = _relu6(depthwise3x3(xv, dwt1_ref) + bias_ref[0])
        y = jnp.dot(y.astype(matmul_dtype), bd1_ref[...],
                    preferred_element_type=jnp.float32)
        y = _relu6(y + bias_ref[1])
        # zero stage-1 rows lying outside each image so stage 2 sees true zero padding
        y = y * mask_ref[...]

        # stage 2: dw3x3 (+BN) + ReLU6, then 1x1 (+BN), no second ReLU6
        z = _relu6(depthwise3x3(y, dwt2_ref) + bias_ref[2])
        z = jnp.dot(z.astype(matmul_dtype), bd2_ref[...],
                    preferred_element_type=jnp.float32)
        z = z + bias_ref[3]

        # identity residual; store each image's owned H rows (lane-dense store)
        res = z + xv
        for j in range(NB):                                # static unroll
            out_ref[j] = res[j * Hp + PAD: j * Hp + PAD + H].astype(out_ref.dtype)

    out = pl.pallas_call(
        kernel,
        out_shape=jax.ShapeDtypeStruct((N, H, WC), f32),
        grid=(G,),
        in_specs=[
            pl.BlockSpec((ROWS, WC), lambda g: (g, 0)),    # NB padded images
            pl.BlockSpec((9, WC), lambda g: (0, 0)),       # dwt1 (masked taps)
            pl.BlockSpec((WC, WC), lambda g: (0, 0)),      # bd1
            pl.BlockSpec((9, WC), lambda g: (0, 0)),       # dwt2 (masked taps)
            pl.BlockSpec((WC, WC), lambda g: (0, 0)),      # bd2
            pl.BlockSpec((4, WC), lambda g: (0, 0)),       # biases
            pl.BlockSpec((ROWS, 1), lambda g: (0, 0)),     # row validity mask
        ],
        out_specs=pl.BlockSpec((NB, H, WC), lambda g: (g, 0, 0)),
        compiler_params=pltpu.CompilerParams(
            dimension_semantics=("parallel",),
        ),
    )(x_tall, dwt1, bd1, dwt2, bd2, biases, row_mask)

    return out.reshape(N, H, W, C)


# ------------------------- pure-JAX reference -------------------------------
def reference_forward(x_nhwc, p):
    C = x_nhwc.shape[-1]

    def dw(x, w):  # w: (3, 3, C) depthwise kernel
        return lax.conv_general_dilated(
            x, w[:, :, None, :], window_strides=(1, 1),
            padding=((1, 1), (1, 1)),
            dimension_numbers=("NHWC", "HWIO", "NHWC"),
            feature_group_count=C)

    y = _relu6(dw(x_nhwc, p["dw1"]) * p["s1"] + p["b1"])
    y = _relu6(jnp.einsum("nhwc,cd->nhwd", y, p["pw1"]) * p["s2"] + p["b2"])
    z = _relu6(dw(y, p["dw2"]) * p["s3"] + p["b3"])
    z = jnp.einsum("nhwc,cd->nhwd", z, p["pw2"]) * p["s4"] + p["b4"]
    return z + x_nhwc


def fold_bn(gamma, beta, mean, var, eps=1e-5):
    scale = gamma / jnp.sqrt(var + eps)
    bias = beta - mean * scale
    return scale.reshape(1, 1, -1), bias.reshape(1, 1, -1)


if __name__ == "__main__":
    # MobileV1ResidualBlock(in_channels=8, planes=8, stride=1, downsample=None,
    #                       pad=1, dilation=1);  W*C = 128 -> fully dense lanes.
    N, C, H, W = 2, 8, 16, 16
    key = jax.random.PRNGKey(0)
    keys = jax.random.split(key, 10)

    x_nchw = jax.random.normal(keys[0], (N, C, H, W), jnp.float32)  # PyTorch layout
    x_nhwc = jnp.transpose(x_nchw, (0, 2, 3, 1))                    # kernel layout

    def bn_params(k):
        k1, k2, k3, k4 = jax.random.split(k, 4)
        gamma = jax.random.uniform(k1, (C,), minval=0.5, maxval=1.5)
        beta = 0.1 * jax.random.normal(k2, (C,))
        mean = 0.1 * jax.random.normal(k3, (C,))
        var = jax.random.uniform(k4, (C,), minval=0.5, maxval=1.5)
        return fold_bn(gamma, beta, mean, var)

    dw1 = jax.random.normal(keys[1], (3, 3, C), jnp.float32) / 3.0
    pw1 = jax.random.normal(keys[2], (C, C), jnp.float32) / jnp.sqrt(C)
    dw2 = jax.random.normal(keys[3], (3, 3, C), jnp.float32) / 3.0
    pw2 = jax.random.normal(keys[4], (C, C), jnp.float32) / jnp.sqrt(C)
    s1, b1 = bn_params(keys[5])
    s2, b2 = bn_params(keys[6])
    s3, b3 = bn_params(keys[7])
    s4, b4 = bn_params(keys[8])

    params = dict(dw1=dw1, s1=s1, b1=b1, pw1=pw1, s2=s2, b2=b2,
                  dw2=dw2, s3=s3, b3=b3, pw2=pw2, s4=s4, b4=b4)

    ref = reference_forward(x_nhwc, params)

    # f32 matmul path: tight check against the f32 reference.
    out_f32 = mobilev1_residual_block(x_nhwc, params, matmul_dtype=jnp.float32)
    out_f32 = jax.block_until_ready(out_f32)
    assert out_f32.shape == (N, H, W, C)
    err_f32 = float(jnp.max(jnp.abs(out_f32 - ref)))
    if err_f32 > 3e-3:
        raise AssertionError(f"Pallas(f32)/ref mismatch, max_err={err_f32}")

    # default (bf16 MXU inputs, f32 accumulation): bf16-level tolerance.
    out_bf16 = mobilev1_residual_block(x_nhwc, params)
    out_bf16 = jax.block_until_ready(out_bf16)
    err_bf16 = float(jnp.max(jnp.abs(out_bf16 - ref)))
    if err_bf16 > 1.5e-1:
        raise AssertionError(f"Pallas(bf16)/ref mismatch, max_err={err_bf16}")

    print("KERNEL_OK")
</pallas_src>

<mosaic_0001>
module attributes {stable_mosaic.version = 11 : i64} {
  func.func @kernel(%arg0: i32, %arg1: memref<48x128xf32, #tpu.memory_space<vmem>>, %arg2: memref<9x128xf32, #tpu.memory_space<vmem>>, %arg3: memref<128x128xf32, #tpu.memory_space<vmem>>, %arg4: memref<9x128xf32, #tpu.memory_space<vmem>>, %arg5: memref<128x128xf32, #tpu.memory_space<vmem>>, %arg6: memref<4x128xf32, #tpu.memory_space<vmem>>, %arg7: memref<48x1xf32, #tpu.memory_space<vmem>>, %arg8: memref<2x16x128xf32, #tpu.memory_space<vmem>>) attributes {dimension_semantics = [#tpu.dimension_semantics<parallel>], iteration_bounds = array<i64: 1>, scalar_prefetch = 0 : i64, scratch_operands = 0 : i64, tpu.core_type = #tpu.core_type<tc>, window_params = [{transform_indices = @transform_0, window_bounds = array<i64: 48, 128>}, {pipeline_mode = #tpu.pipeline_mode<synchronous>, transform_indices = @transform_1, window_bounds = array<i64: 9, 128>}, {pipeline_mode = #tpu.pipeline_mode<synchronous>, transform_indices = @transform_2, window_bounds = array<i64: 128, 128>}, {pipeline_mode = #tpu.pipeline_mode<synchronous>, transform_indices = @transform_3, window_bounds = array<i64: 9, 128>}, {pipeline_mode = #tpu.pipeline_mode<synchronous>, transform_indices = @transform_4, window_bounds = array<i64: 128, 128>}, {pipeline_mode = #tpu.pipeline_mode<synchronous>, transform_indices = @transform_5, window_bounds = array<i64: 4, 128>}, {pipeline_mode = #tpu.pipeline_mode<synchronous>, transform_indices = @transform_6, window_bounds = array<i64: 48, 1>}, {transform_indices = @transform_7, window_bounds = array<i64: 2, 16, 128>}]} {
    %c0 = arith.constant 0 : index
    %c0_0 = arith.constant 0 : index
    %0 = vector.load %arg1[%c0, %c0_0] : memref<48x128xf32, #tpu.memory_space<vmem>>, vector<48x128xf32>
    %c1_i32 = arith.constant 1 : i32
    %1 = tpu.dynamic_rotate %0 by %c1_i32 dim 0 : vector<48x128xf32>, i32 -> vector<48x128xf32>
    %c8_i32 = arith.constant 8 : i32
    %2 = tpu.dynamic_rotate %1 by %c8_i32 dim 1 : vector<48x128xf32>, i32 -> vector<48x128xf32>
    %c0_1 = arith.constant 0 : index
    %c0_2 = arith.constant 0 : index
    %3 = vector.load %arg2[%c0_1, %c0_2] : memref<9x128xf32, #tpu.memory_space<vmem>>, vector<1x128xf32>
    %4 = vector.shape_cast %3 : vector<1x128xf32> to vector<128xf32>
    %5 = vector.shape_cast %4 : vector<128xf32> to vector<1x128xf32>
    %6 = vector.broadcast %5 : vector<1x128xf32> to vector<48x128xf32>
    %7 = arith.mulf %2, %6 : vector<48x128xf32>
    %c1 = arith.constant 1 : index
    %c0_3 = arith.constant 0 : index
    %8 = vector.load %arg2[%c1, %c0_3] : memref<9x128xf32, #tpu.memory_space<vmem>>, vector<1x128xf32>
    %9 = vector.shape_cast %8 : vector<1x128xf32> to vector<128xf32>
    %10 = vector.shape_cast %9 : vector<128xf32> to vector<1x128xf32>
    %11 = vector.broadcast %10 : vector<1x128xf32> to vector<48x128xf32>
    %12 = arith.mulf %1, %11 : vector<48x128xf32>
    %13 = arith.addf %7, %12 : vector<48x128xf32>
    %c120_i32 = arith.constant 120 : i32
    %14 = tpu.dynamic_rotate %1 by %c120_i32 dim 1 : vector<48x128xf32>, i32 -> vector<48x128xf32>
    %c2 = arith.constant 2 : index
    %c0_4 = arith.constant 0 : index
    %15 = vector.load %arg2[%c2, %c0_4] : memref<9x128xf32, #tpu.memory_space<vmem>>, vector<1x128xf32>
    %16 = vector.shape_cast %15 : vector<1x128xf32> to vector<128xf32>
    %17 = vector.shape_cast %16 : vector<128xf32> to vector<1x128xf32>
    %18 = vector.broadcast %17 : vector<1x128xf32> to vector<48x128xf32>
    %19 = arith.mulf %14, %18 : vector<48x128xf32>
    %20 = arith.addf %13, %19 : vector<48x128xf32>
    %c8_i32_5 = arith.constant 8 : i32
    %21 = tpu.dynamic_rotate %0 by %c8_i32_5 dim 1 : vector<48x128xf32>, i32 -> vector<48x128xf32>
    %c3 = arith.constant 3 : index
    %c0_6 = arith.constant 0 : index
    %22 = vector.load %arg2[%c3, %c0_6] : memref<9x128xf32, #tpu.memory_space<vmem>>, vector<1x128xf32>
    %23 = vector.shape_cast %22 : vector<1x128xf32> to vector<128xf32>
    %24 = vector.shape_cast %23 : vector<128xf32> to vector<1x128xf32>
    %25 = vector.broadcast %24 : vector<1x128xf32> to vector<48x128xf32>
    %26 = arith.mulf %21, %25 : vector<48x128xf32>
    %27 = arith.addf %20, %26 : vector<48x128xf32>
    %c4 = arith.constant 4 : index
    %c0_7 = arith.constant 0 : index
    %28 = vector.load %arg2[%c4, %c0_7] : memref<9x128xf32, #tpu.memory_space<vmem>>, vector<1x128xf32>
    %29 = vector.shape_cast %28 : vector<1x128xf32> to vector<128xf32>
    %30 = vector.shape_cast %29 : vector<128xf32> to vector<1x128xf32>
    %31 = vector.broadcast %30 : vector<1x128xf32> to vector<48x128xf32>
    %32 = arith.mulf %0, %31 : vector<48x128xf32>
    %33 = arith.addf %27, %32 : vector<48x128xf32>
    %c120_i32_8 = arith.constant 120 : i32
    %34 = tpu.dynamic_rotate %0 by %c120_i32_8 dim 1 : vector<48x128xf32>, i32 -> vector<48x128xf32>
    %c5 = arith.constant 5 : index
    %c0_9 = arith.constant 0 : index
    %35 = vector.load %arg2[%c5, %c0_9] : memref<9x128xf32, #tpu.memory_space<vmem>>, vector<1x128xf32>
    %36 = vector.shape_cast %35 : vector<1x128xf32> to vector<128xf32>
    %37 = vector.shape_cast %36 : vector<128xf32> to vector<1x128xf32>
    %38 = vector.broadcast %37 : vector<1x128xf32> to vector<48x128xf32>
    %39 = arith.mulf %34, %38 : vector<48x128xf32>
    %40 = arith.addf %33, %39 : vector<48x128xf32>
    %c47_i32 = arith.constant 47 : i32
    %41 = tpu.dynamic_rotate %0 by %c47_i32 dim 0 : vector<48x128xf32>, i32 -> vector<48x128xf32>
    %c8_i32_10 = arith.constant 8 : i32
    %42 = tpu.dynamic_rotate %41 by %c8_i32_10 dim 1 : vector<48x128xf32>, i32 -> vector<48x128xf32>
    %c6 = arith.constant 6 : index
    %c0_11 = arith.constant 0 : index
    %43 = vector.load %arg2[%c6, %c0_11] : memref<9x128xf32, #tpu.memory_space<vmem>>, vector<1x128xf32>
    %44 = vector.shape_cast %43 : vector<1x128xf32> to vector<128xf32>
    %45 = vector.shape_cast %44 : vector<128xf32> to vector<1x128xf32>
    %46 = vector.broadcast %45 : vector<1x128xf32> to vector<48x128xf32>
    %47 = arith.mulf %42, %46 : vector<48x128xf32>
    %48 = arith.addf %40, %47 : vector<48x128xf32>
    %c7 = arith.constant 7 : index
    %c0_12 = arith.constant 0 : index
    %49 = vector.load %arg2[%c7, %c0_12] : memref<9x128xf32, #tpu.memory_space<vmem>>, vector<1x128xf32>
    %50 = vector.shape_cast %49 : vector<1x128xf32> to vector<128xf32>
    %51 = vector.shape_cast %50 : vector<128xf32> to vector<1x128xf32>
    %52 = vector.broadcast %51 : vector<1x128xf32> to vector<48x128xf32>
    %53 = arith.mulf %41, %52 : vector<48x128xf32>
    %54 = arith.addf %48, %53 : vector<48x128xf32>
    %c120_i32_13 = arith.constant 120 : i32
    %55 = tpu.dynamic_rotate %41 by %c120_i32_13 dim 1 : vector<48x128xf32>, i32 -> vector<48x128xf32>
    %c8 = arith.constant 8 : index
    %c0_14 = arith.constant 0 : index
    %56 = vector.load %arg2[%c8, %c0_14] : memref<9x128xf32, #tpu.memory_space<vmem>>, vector<1x128xf32>
    %57 = vector.shape_cast %56 : vector<1x128xf32> to vector<128xf32>
    %58 = vector.shape_cast %57 : vector<128xf32> to vector<1x128xf32>
    %59 = vector.broadcast %58 : vector<1x128xf32> to vector<48x128xf32>
    %60 = arith.mulf %55, %59 : vector<48x128xf32>
    %61 = arith.addf %54, %60 : vector<48x128xf32>
    %c0_15 = arith.constant 0 : index
    %c0_16 = arith.constant 0 : index
    %62 = vector.load %arg6[%c0_15, %c0_16] : memref<4x128xf32, #tpu.memory_space<vmem>>, vector<1x128xf32>
    %63 = vector.shape_cast %62 : vector<1x128xf32> to vector<128xf32>
    %64 = vector.shape_cast %63 : vector<128xf32> to vector<1x128xf32>
    %65 = vector.broadcast %64 : vector<1x128xf32> to vector<48x128xf32>
    %66 = arith.addf %61, %65 : vector<48x128xf32>
    %cst = arith.constant 0.000000e+00 : f32
    %cst_17 = arith.constant 6.000000e+00 : f32
    %67 = vector.broadcast %cst : f32 to vector<48x128xf32>
    %68 = arith.maximumf %67, %66 : vector<48x128xf32>
    %69 = vector.broadcast %cst_17 : f32 to vector<48x128xf32>
    %70 = arith.minimumf %69, %68 : vector<48x128xf32>
    %c0_18 = arith.constant 0 : index
    %c0_19 = arith.constant 0 : index
    %71 = vector.load %arg3[%c0_18, %c0_19] : memref<128x128xf32, #tpu.memory_space<vmem>>, vector<128x128xf32>
    %cst_20 = arith.constant dense<0.000000e+00> : vector<48x128xf32>
    %72 = tpu.matmul %70, %71, %cst_20 {dimension_numbers = #tpu.dot_dimension_numbers<[1], [0], [0], [1], [0, 0, 1, 1], [], []>} : vector<48x128xf32>, vector<128x128xf32>, vector<48x128xf32> -> vector<48x128xf32>
    %c1_21 = arith.constant 1 : index
    %c0_22 = arith.constant 0 : index
    %73 = vector.load %arg6[%c1_21, %c0_22] : memref<4x128xf32, #tpu.memory_space<vmem>>, vector<1x128xf32>
    %74 = vector.shape_cast %73 : vector<1x128xf32> to vector<128xf32>
    %75 = vector.shape_cast %74 : vector<128xf32> to vector<1x128xf32>
    %76 = vector.broadcast %75 : vector<1x128xf32> to vector<48x128xf32>
    %77 = arith.addf %72, %76 : vector<48x128xf32>
    %cst_23 = arith.constant 0.000000e+00 : f32
    %cst_24 = arith.constant 6.000000e+00 : f32
    %78 = vector.broadcast %cst_23 : f32 to vector<48x128xf32>
    %79 = arith.maximumf %78, %77 : vector<48x128xf32>
    %80 = vector.broadcast %cst_24 : f32 to vector<48x128xf32>
    %81 = arith.minimumf %80, %79 : vector<48x128xf32>
    %c0_25 = arith.constant 0 : index
    %c0_26 = arith.constant 0 : index
    %82 = vector.load %arg7[%c0_25, %c0_26] : memref<48x1xf32, #tpu.memory_space<vmem>>, vector<48x1xf32>
    %83 = vector.broadcast %82 : vector<48x1xf32> to vector<48x128xf32>
    %84 = arith.mulf %81, %83 : vector<48x128xf32>
    %c1_i32_27 = arith.constant 1 : i32
    %85 = tpu.dynamic_rotate %84 by %c1_i32_27 dim 0 : vector<48x128xf32>, i32 -> vector<48x128xf32>
    %c8_i32_28 = arith.constant 8 : i32
    %86 = tpu.dynamic_rotate %85 by %c8_i32_28 dim 1 : vector<48x128xf32>, i32 -> vector<48x128xf32>
    %c0_29 = arith.constant 0 : index
    %c0_30 = arith.constant 0 : index
    %87 = vector.load %arg4[%c0_29, %c0_30] : memref<9x128xf32, #tpu.memory_space<vmem>>, vector<1x128xf32>
    %88 = vector.shape_cast %87 : vector<1x128xf32> to vector<128xf32>
    %89 = vector.shape_cast %88 : vector<128xf32> to vector<1x128xf32>
    %90 = vector.broadcast %89 : vector<1x128xf32> to vector<48x128xf32>
    %91 = arith.mulf %86, %90 : vector<48x128xf32>
    %c1_31 = arith.constant 1 : index
    %c0_32 = arith.constant 0 : index
    %92 = vector.load %arg4[%c1_31, %c0_32] : memref<9x128xf32, #tpu.memory_space<vmem>>, vector<1x128xf32>
    %93 = vector.shape_cast %92 : vector<1x128xf32> to vector<128xf32>
    %94 = vector.shape_cast %93 : vector<128xf32> to vector<1x128xf32>
    %95 = vector.broadcast %94 : vector<1x128xf32> to vector<48x128xf32>
    %96 = arith.mulf %85, %95 : vector<48x128xf32>
    %97 = arith.addf %91, %96 : vector<48x128xf32>
    %c120_i32_33 = arith.constant 120 : i32
    %98 = tpu.dynamic_rotate %85 by %c120_i32_33 dim 1 : vector<48x128xf32>, i32 -> vector<48x128xf32>
    %c2_34 = arith.constant 2 : index
    %c0_35 = arith.constant 0 : index
    %99 = vector.load %arg4[%c2_34, %c0_35] : memref<9x128xf32, #tpu.memory_space<vmem>>, vector<1x128xf32>
    %100 = vector.shape_cast %99 : vector<1x128xf32> to vector<128xf32>
    %101 = vector.shape_cast %100 : vector<128xf32> to vector<1x128xf32>
    %102 = vector.broadcast %101 : vector<1x128xf32> to vector<48x128xf32>
    %103 = arith.mulf %98, %102 : vector<48x128xf32>
    %104 = arith.addf %97, %103 : vector<48x128xf32>
    %c8_i32_36 = arith.constant 8 : i32
    %105 = tpu.dynamic_rotate %84 by %c8_i32_36 dim 1 : vector<48x128xf32>, i32 -> vector<48x128xf32>
    %c3_37 = arith.constant 3 : index
    %c0_38 = arith.constant 0 : index
    %106 = vector.load %arg4[%c3_37, %c0_38] : memref<9x128xf32, #tpu.memory_space<vmem>>, vector<1x128xf32>
    %107 = vector.shape_cast %106 : vector<1x128xf32> to vector<128xf32>
    %108 = vector.shape_cast %107 : vector<128xf32> to vector<1x128xf32>
    %109 = vector.broadcast %108 : vector<1x128xf32> to vector<48x128xf32>
    %110 = arith.mulf %105, %109 : vector<48x128xf32>
    %111 = arith.addf %104, %110 : vector<48x128xf32>
    %c4_39 = arith.constant 4 : index
    %c0_40 = arith.constant 0 : index
    %112 = vector.load %arg4[%c4_39, %c0_40] : memref<9x128xf32, #tpu.memory_space<vmem>>, vector<1x128xf32>
    %113 = vector.shape_cast %112 : vector<1x128xf32> to vector<128xf32>
    %114 = vector.shape_cast %113 : vector<128xf32> to vector<1x128xf32>
    %115 = vector.broadcast %114 : vector<1x128xf32> to vector<48x128xf32>
    %116 = arith.mulf %84, %115 : vector<48x128xf32>
    %117 = arith.addf %111, %116 : vector<48x128xf32>
    %c120_i32_41 = arith.constant 120 : i32
    %118 = tpu.dynamic_rotate %84 by %c120_i32_41 dim 1 : vector<48x128xf32>, i32 -> vector<48x128xf32>
    %c5_42 = arith.constant 5 : index
    %c0_43 = arith.constant 0 : index
    %119 = vector.load %arg4[%c5_42, %c0_43] : memref<9x128xf32, #tpu.memory_space<vmem>>, vector<1x128xf32>
    %120 = vector.shape_cast %119 : vector<1x128xf32> to vector<128xf32>
    %121 = vector.shape_cast %120 : vector<128xf32> to vector<1x128xf32>
    %122 = vector.broadcast %121 : vector<1x128xf32> to vector<48x128xf32>
    %123 = arith.mulf %118, %122 : vector<48x128xf32>
    %124 = arith.addf %117, %123 : vector<48x128xf32>
    %c47_i32_44 = arith.constant 47 : i32
    %125 = tpu.dynamic_rotate %84 by %c47_i32_44 dim 0 : vector<48x128xf32>, i32 -> vector<48x128xf32>
    %c8_i32_45 = arith.constant 8 : i32
    %126 = tpu.dynamic_rotate %125 by %c8_i32_45 dim 1 : vector<48x128xf32>, i32 -> vector<48x128xf32>
    %c6_46 = arith.constant 6 : index
    %c0_47 = arith.constant 0 : index
    %127 = vector.load %arg4[%c6_46, %c0_47] : memref<9x128xf32, #tpu.memory_space<vmem>>, vector<1x128xf32>
    %128 = vector.shape_cast %127 : vector<1x128xf32> to vector<128xf32>
    %129 = vector.shape_cast %128 : vector<128xf32> to vector<1x128xf32>
    %130 = vector.broadcast %129 : vector<1x128xf32> to vector<48x128xf32>
    %131 = arith.mulf %126, %130 : vector<48x128xf32>
    %132 = arith.addf %124, %131 : vector<48x128xf32>
    %c7_48 = arith.constant 7 : index
    %c0_49 = arith.constant 0 : index
    %133 = vector.load %arg4[%c7_48, %c0_49] : memref<9x128xf32, #tpu.memory_space<vmem>>, vector<1x128xf32>
    %134 = vector.shape_cast %133 : vector<1x128xf32> to vector<128xf32>
    %135 = vector.shape_cast %134 : vector<128xf32> to vector<1x128xf32>
    %136 = vector.broadcast %135 : vector<1x128xf32> to vector<48x128xf32>
    %137 = arith.mulf %125, %136 : vector<48x128xf32>
    %138 = arith.addf %132, %137 : vector<48x128xf32>
    %c120_i32_50 = arith.constant 120 : i32
    %139 = tpu.dynamic_rotate %125 by %c120_i32_50 dim 1 : vector<48x128xf32>, i32 -> vector<48x128xf32>
    %c8_51 = arith.constant 8 : index
    %c0_52 = arith.constant 0 : index
    %140 = vector.load %arg4[%c8_51, %c0_52] : memref<9x128xf32, #tpu.memory_space<vmem>>, vector<1x128xf32>
    %141 = vector.shape_cast %140 : vector<1x128xf32> to vector<128xf32>
    %142 = vector.shape_cast %141 : vector<128xf32> to vector<1x128xf32>
    %143 = vector.broadcast %142 : vector<1x128xf32> to vector<48x128xf32>
    %144 = arith.mulf %139, %143 : vector<48x128xf32>
    %145 = arith.addf %138, %144 : vector<48x128xf32>
    %c2_53 = arith.constant 2 : index
    %c0_54 = arith.constant 0 : index
    %146 = vector.load %arg6[%c2_53, %c0_54] : memref<4x128xf32, #tpu.memory_space<vmem>>, vector<1x128xf32>
    %147 = vector.shape_cast %146 : vector<1x128xf32> to vector<128xf32>
    %148 = vector.shape_cast %147 : vector<128xf32> to vector<1x128xf32>
    %149 = vector.broadcast %148 : vector<1x128xf32> to vector<48x128xf32>
    %150 = arith.addf %145, %149 : vector<48x128xf32>
    %cst_55 = arith.constant 0.000000e+00 : f32
    %cst_56 = arith.constant 6.000000e+00 : f32
    %151 = vector.broadcast %cst_55 : f32 to vector<48x128xf32>
    %152 = arith.maximumf %151, %150 : vector<48x128xf32>
    %153 = vector.broadcast %cst_56 : f32 to vector<48x128xf32>
    %154 = arith.minimumf %153, %152 : vector<48x128xf32>
    %c0_57 = arith.constant 0 : index
    %c0_58 = arith.constant 0 : index
    %155 = vector.load %arg5[%c0_57, %c0_58] : memref<128x128xf32, #tpu.memory_space<vmem>>, vector<128x128xf32>
    %cst_59 = arith.constant dense<0.000000e+00> : vector<48x128xf32>
    %156 = tpu.matmul %154, %155, %cst_59 {dimension_numbers = #tpu.dot_dimension_numbers<[1], [0], [0], [1], [0, 0, 1, 1], [], []>} : vector<48x128xf32>, vector<128x128xf32>, vector<48x128xf32> -> vector<48x128xf32>
    %c3_60 = arith.constant 3 : index
    %c0_61 = arith.constant 0 : index
    %157 = vector.load %arg6[%c3_60, %c0_61] : memref<4x128xf32, #tpu.memory_space<vmem>>, vector<1x128xf32>
    %158 = vector.shape_cast %157 : vector<1x128xf32> to vector<128xf32>
    %159 = vector.shape_cast %158 : vector<128xf32> to vector<1x128xf32>
    %160 = vector.broadcast %159 : vector<1x128xf32> to vector<48x128xf32>
    %161 = arith.addf %156, %160 : vector<48x128xf32>
    %162 = arith.addf %161, %0 : vector<48x128xf32>
    %163 = vector.extract_strided_slice %162 {offsets = [2, 0], sizes = [16, 128], strides = [1, 1]} : vector<48x128xf32> to vector<16x128xf32>
    %c0_62 = arith.constant 0 : index
    %c0_63 = arith.constant 0 : index
    %c0_64 = arith.constant 0 : index
    %164 = vector.load %arg8[%c0_62, %c0_63, %c0_64] : memref<2x16x128xf32, #tpu.memory_space<vmem>>, vector<1x16x128xf32>
    %165 = vector.shape_cast %164 : vector<1x16x128xf32> to vector<16x128xf32>
    %166 = vector.shape_cast %163 : vector<16x128xf32> to vector<1x16x128xf32>
    tpu.vector_store %arg8[%c0_62, %c0_63, %c0_64], %166 {strides = array<i32>} : memref<2x16x128xf32, #tpu.memory_space<vmem>>, vector<1x16x128xf32>,
    %167 = vector.extract_strided_slice %162 {offsets = [26, 0], sizes = [16, 128], strides = [1, 1]} : vector<48x128xf32> to vector<16x128xf32>
    %c1_65 = arith.constant 1 : index
    %c0_66 = arith.constant 0 : index
    %c0_67 = arith.constant 0 : index
    %168 = vector.load %arg8[%c1_65, %c0_66, %c0_67] : memref<2x16x128xf32, #tpu.memory_space<vmem>>, vector<1x16x128xf32>
    %169 = vector.shape_cast %168 : vector<1x16x128xf32> to vector<16x128xf32>
    %170 = vector.shape_cast %167 : vector<16x128xf32> to vector<1x16x128xf32>
    tpu.vector_store %arg8[%c1_65, %c0_66, %c0_67], %170 {strides = array<i32>} : memref<2x16x128xf32, #tpu.memory_space<vmem>>, vector<1x16x128xf32>,
    return
  }
  func.func @transform_0(%arg0: i32) -> (i32, i32) {
    %c0_i32 = arith.constant 0 : i32
    %c0_i32_0 = arith.constant 0 : i32
    return %arg0, %c0_i32 : i32, i32
  }
  func.func @transform_1(%arg0: i32) -> (i32, i32) {
    %c0_i32 = arith.constant 0 : i32
    %c0_i32_0 = arith.constant 0 : i32
    %c0_i32_1 = arith.constant 0 : i32
    return %c0_i32, %c0_i32_0 : i32, i32
  }
  func.func @transform_2(%arg0: i32) -> (i32, i32) {
    %c0_i32 = arith.constant 0 : i32
    %c0_i32_0 = arith.constant 0 : i32
    %c0_i32_1 = arith.constant 0 : i32
    return %c0_i32, %c0_i32_0 : i32, i32
  }
  func.func @transform_3(%arg0: i32) -> (i32, i32) {
    %c0_i32 = arith.constant 0 : i32
    %c0_i32_0 = arith.constant 0 : i32
    %c0_i32_1 = arith.constant 0 : i32
    return %c0_i32, %c0_i32_0 : i32, i32
  }
  func.func @transform_4(%arg0: i32) -> (i32, i32) {
    %c0_i32 = arith.constant 0 : i32
    %c0_i32_0 = arith.constant 0 : i32
    %c0_i32_1 = arith.constant 0 : i32
    return %c0_i32, %c0_i32_0 : i32, i32
  }
  func.func @transform_5(%arg0: i32) -> (i32, i32) {
    %c0_i32 = arith.constant 0 : i32
    %c0_i32_0 = arith.constant 0 : i32
    %c0_i32_1 = arith.constant 0 : i32
    return %c0_i32, %c0_i32_0 : i32, i32
  }
  func.func @transform_6(%arg0: i32) -> (i32, i32) {
    %c0_i32 = arith.constant 0 : i32
    %c0_i32_0 = arith.constant 0 : i32
    %c0_i32_1 = arith.constant 0 : i32
    return %c0_i32, %c0_i32_0 : i32, i32
  }
  func.func @transform_7(%arg0: i32) -> (i32, i32, i32) {
    %c0_i32 = arith.constant 0 : i32
    %c0_i32_0 = arith.constant 0 : i32
    %c0_i32_1 = arith.constant 0 : i32
    return %arg0, %c0_i32, %c0_i32_0 : i32, i32, i32
  }
}

</mosaic_0001>

<bundles_post_ra>
// kernel: tpu_custom_call.1
= control target key start
LH: loop header
LB: loop body
LE: loop exit
PB: predicated region body
PF: predicated region fallthrough
CT: control target
= control target key end

     0   :  { %12 = vsyncpa [#allocation3], 0  ;;  %s2008_s0 = inlined_call_operand.vmem [shape: f32[48,128], index: 0, kind: input, shape index: {}]   ;;  %s2009_s1 = inlined_call_operand.hbm [shape: f32[9,128], index: 1, kind: input, shape index: {}]   ;;  %s2010_s2 = inlined_call_operand.hbm [shape: f32[128,128], index: 2, kind: input, shape index: {}]   ;;  %s2011_s3 = inlined_call_operand.hbm [shape: f32[9,128], index: 3, kind: input, shape index: {}]   ;;  %s2012_s4 = inlined_call_operand.hbm [shape: f32[128,128], index: 4, kind: input, shape index: {}]   ;;  %s2013_s5 = inlined_call_operand.vmem [shape: f32[4,128], index: 5, kind: input, shape index: {}]   ;;  %s2014_s6 = inlined_call_operand.vmem [shape: f32[48,1], index: 6, kind: input, shape index: {}]   ;;  %s2015_s7 = inlined_call_operand.hbm [shape: f32[2,16,128], index: 7, kind: output, shape index: {}]  }
   0x1   :  { %13 = vsyncpa [#allocation6], 0 }
   0x2   :  { %14 = vsyncpa [#allocation9], 0 }
   0x3   :  { %15 = vsyncpa [#allocation4], 0  ;;  %s1289_s24 = smov [#allocation5]   ;;  %s1290_s26 = smov [#allocation2]  }
   0x4   :  { %s35_s25 = sshll.u32 %s1289_s24, 4  ;;  %s23_s27 = sshll.u32 %s1290_s26, 4  ;;  %s36_s25 = int_to_ptr.vmem [resolvable:$true] %s35_s25  ;;  %s1338_s27 = int_to_ptr.vmem [resolvable:$true] %s23_s27 }
   0x5   :  { %s1171_s30 = scalar_lea.hbm %s2010_s2, 2048 }
   0x6   :  { %p1172_p0 = scmp.ne.s32.totalorder %s2010_s2, %s1171_s30  ;;  %p1175_p1 = scmp.lt.u32.totalorder %s1171_s30, %s2010_s2 }
   0x8   :  { %p1177_p2 = pnand %p1175_p1, %p1172_p0 }
   0xa   :  { %1180 = shalt.err (!%p1177_p2)
}
   0xb   :  { %s1181_s12 = scalar_lea.vmem %s36_s25, 2048  ;;  %p1186_p4 = scmp.lt.s32.totalorder %s36_s25, %s36_s25 }
   0xc   :  { %p1182_p3 = scmp.ne.s32.totalorder %s36_s25, %s1181_s12  ;;  %p1187_p5 = scmp.lt.s32.totalorder %s1181_s12, %s1181_s12 }
   0xe   :  { %p1188_p6 = por %p1187_p5, %p1186_p4 }
  0x10   :  { %p1189_p7 = pnand %p1188_p6, %p1182_p3 }
  0x12   :  { %1192 = shalt.err (!%p1189_p7)
}
  0x13   :  { %s1291_s13 = smov 128   ;;  %s1292_s14 = smov 8  }
  0x14   :  { %41 = dma.hbm_to_vmem [thread:$0]  %s2010_s2, 2048, %s36_s25, [#allocation6], %s1291_s13, %s1291_s13, %s1292_s14  }
  0x15   :  { %s1193_s19 = scalar_lea.hbm %s2009_s1, 256 }
  0x16   :  { %p1194_p8 = scmp.ne.s32.totalorder %s2009_s1, %s1193_s19  ;;  %p1197_p9 = scmp.lt.u32.totalorder %s1193_s19, %s2009_s1 }
  0x18   :  { %p1199_p10 = pnand %p1197_p9, %p1194_p8 }
  0x1a   :  { %1202 = shalt.err (!%p1199_p10)
}
  0x1b   :  { %s1203_s24 = scalar_lea.vmem %s1338_s27, 256  ;;  %p1208_p12 = scmp.lt.s32.totalorder %s1338_s27, %s1338_s27 }
  0x1c   :  { %p1204_p11 = scmp.ne.s32.totalorder %s1338_s27, %s1203_s24  ;;  %p1209_p13 = scmp.lt.s32.totalorder %s1203_s24, %s1203_s24 }
  0x1e   :  { %p1210_p0 = por %p1209_p13, %p1208_p12 }
  0x20   :  { %p1211_p1 = pnand %p1210_p0, %p1204_p11 }
  0x22   :  { %1214 = shalt.err (!%p1211_p1)
}
  0x23   :  { %29 = dma.hbm_to_vmem [thread:$0]  %s2009_s1, 256, %s1338_s27, [#allocation3], %s1291_s13, %s1291_s13, %s1292_s14  }
  0x24   :  { %s1293_s26 = smov [#allocation7]   ;;  %s1294_s29 = smov [#allocation8]  }
  0x25   :  { %s47_s28 = sshll.u32 %s1293_s26, 4  ;;  %s59_s30 = sshll.u32 %s1294_s29, 4  ;;  %s48_s28 = int_to_ptr.vmem [resolvable:$true] %s47_s28  ;;  %s1375_s30 = int_to_ptr.vmem [resolvable:$true] %s59_s30 }
  0x26   :  { %s1215_s10 = scalar_lea.hbm %s2011_s3, 256 }
  0x27   :  { %p1216_p2 = scmp.ne.s32.totalorder %s2011_s3, %s1215_s10  ;;  %p1219_p3 = scmp.lt.u32.totalorder %s1215_s10, %s2011_s3 }
  0x29   :  { %p1221_p4 = pnand %p1219_p3, %p1216_p2 }
  0x2b   :  { %1224 = shalt.err (!%p1221_p4)
}
  0x2c   :  { %s1225_s1 = scalar_lea.vmem %s48_s28, 256  ;;  %p1230_p6 = scmp.lt.s32.totalorder %s48_s28, %s48_s28 }
  0x2d   :  { %p1226_p5 = scmp.ne.s32.totalorder %s48_s28, %s1225_s1  ;;  %p1231_p7 = scmp.lt.s32.totalorder %s1225_s1, %s1225_s1 }
  0x2f   :  { %p1232_p8 = por %p1231_p7, %p1230_p6 }
  0x31   :  { %p1233_p9 = pnand %p1232_p8, %p1226_p5 }
  0x33   :  { %1236 = shalt.err (!%p1233_p9)
}
  0x34   :  { %53 = dma.hbm_to_vmem [thread:$0]  %s2011_s3, 256, %s48_s28, [#allocation6], %s1291_s13, %s1291_s13, %s1292_s14  }
  0x35   :  { %s1237_s20 = scalar_lea.hbm %s2012_s4, 2048 }
  0x36   :  { %p1238_p10 = scmp.ne.s32.totalorder %s2012_s4, %s1237_s20  ;;  %p1241_p11 = scmp.lt.u32.totalorder %s1237_s20, %s2012_s4 }
  0x38   :  { %p1243_p12 = pnand %p1241_p11, %p1238_p10 }
  0x3a   :  { %1246 = shalt.err (!%p1243_p12)
}
  0x3b   :  { %s1247_s2 = scalar_lea.vmem %s1375_s30, 2048  ;;  %p1252_p0 = scmp.lt.s32.totalorder %s1375_s30, %s1375_s30 }
  0x3c   :  { %p1248_p13 = scmp.ne.s32.totalorder %s1375_s30, %s1247_s2  ;;  %p1253_p1 = scmp.lt.s32.totalorder %s1247_s2, %s1247_s2 }
  0x3e   :  { %p1254_p2 = por %p1253_p1, %p1252_p0 }
  0x40   :  { %p1255_p3 = pnand %p1254_p2, %p1248_p13 }
  0x42   :  { %1258 = shalt.err (!%p1255_p3)
}
  0x43   :  { %65 = dma.hbm_to_vmem [thread:$0]  %s2012_s4, 2048, %s1375_s30, [#allocation9], %s1291_s13, %s1291_s13, %s1292_s14  }
  0x44   :  { %1281 = dma.done.wait [#allocation3], 256  }
  0x45   :  { %1282 = vsyncadd [#allocation3], 4294967040 }
  0x46   :  { %1283 = dma.done.wait [#allocation6], 2304  }
  0x47   :  { %1284 = vsyncadd [#allocation6], 4294964992 }
  0x48   :  { %1285 = dma.done.wait [#allocation9], 2048  }
  0x49   :  { %1286 = vsyncadd [#allocation9], 4294965248  ;;  %v94_v0 = vlaneseq  ;;  %v1417_v2 = vld [vmem:[%s2008_s0] sm:$0xff]  ;;  %v1422_v3 = vld [vmem:[%s2008_s0 + $0x28] sm:$0xff]  ;;  %s1295_s11 = smov 120   ;;  %v1296_v57 = vmov 0  }
  0x4a   :  { %172 = vrot.lane.b32.xlu1 %v1417_v2, %s1292_s14  ;;  %v88_v4 = vrot.slane %v1417_v2, 7  ;;  %v93_v5 = vrot.slane %v1422_v3, 7  ;;  %v1432_v6 = vld [vmem:[%s2008_s0 + $0x8] sm:$0xff]  ;;  %v1438_v8 = vld [vmem:[%s2008_s0 + $0x10] sm:$0xff]  ;;  %v1456_v12 = vld [vmem:[%s2008_s0 + $0x18] sm:$0xff]  ;;  %v247_v29 = vrot.slane %v1417_v2, 1  ;;  %1163 = vset.pattern.permute.xlu0 %v1296_v57 }
  0x4b   :  { %v1412_v1 = vshrl.u32 %v94_v0, 7  ;;  %v89_v7 = vrot.slane %v1432_v6, 7  ;;  %v90_v11 = vrot.slane %v1438_v8, 7  ;;  %v91_v14 = vrot.slane %v1456_v12, 7  ;;  %v1478_v16 = vld [vmem:[%s2008_s0 + $0x20] sm:$0xff]  ;;  %v358_v17 = vld [vmem:[#allocation5] sm:$0xff]  ;;  %1164 = vset.pattern.permute.xlu1 %v1296_v57 }
  0x4c   :  { %v359_v18 = vld [vmem:[#allocation5 + $0x8] sm:$0xff]  ;;  %v92_v20 = vrot.slane %v1478_v16, 7  ;;  %v360_v21 = vld [vmem:[#allocation5 + $0x10] sm:$0xff]  ;;  %v361_v22 = vld [vmem:[#allocation5 + $0x18] sm:$0xff]  ;;  %v248_v30 = vrot.slane %v1432_v6, 1  ;;  %v249_v35 = vrot.slane %v1438_v8, 1 }
  0x4d   :  { %vm96_vm0 = vcmp.lt.s32.totalorder %v1412_v1, 1  ;;  %v1090_v19 = vpack.c.bf16 %v359_v18, %v358_v17  ;;  %v1094_v23 = vpack.c.bf16 %v361_v22, %v360_v21  ;;  %v362_v26 = vld [vmem:[#allocation5 + $0x20] sm:$0xff]  ;;  %v363_v27 = vld [vmem:[#allocation5 + $0x28] sm:$0xff]  ;;  %vm253_vm1 = vcmp.lt.s32.totalorder %v1412_v1, 7  ;;  %v364_v31 = vld [vmem:[#allocation5 + $0x30] sm:$0xff]  ;;  %s1297_s17 = smov [#allocation10]  }
  0x4e   :  { %v1442_v9 = vsel %vm96_vm0, %v93_v5, %v88_v4  ;;  %v1450_v10 = vsel %vm96_vm0, %v88_v4, %v89_v7  ;;  %v1464_v13 = vsel %vm96_vm0, %v89_v7, %v90_v11  ;;  %v1473_v15 = vsel %vm96_vm0, %v90_v11, %v91_v14  ;;  %v365_v32 = vld [vmem:[#allocation5 + $0x38] sm:$0xff]  ;;  %v366_v36 = vld [vmem:[#allocation5 + $0x40] sm:$0xff]  ;;  %v367_v37 = vld [vmem:[#allocation5 + $0x48] sm:$0xff]  ;;  %s928_s18 = sshll.u32 %s1297_s17, 4  ;;  %s929_s18 = int_to_ptr.vmem [resolvable:$true] %s928_s18 }
  0x4f   :  { %103 = vrot.lane.b32.xlu0 %v1442_v9, %s1292_s14  ;;  %143 = vrot.lane.b32.xlu1 %v1442_v9, %s1295_s11  ;;  %v1491_v24 = vsel %vm96_vm0, %v91_v14, %v92_v20  ;;  %v1495_v25 = vsel %vm96_vm0, %v92_v20, %v93_v5  ;;  %v1098_v28 = vpack.c.bf16 %v363_v27, %v362_v26  ;;  %v368_v40 = vld [vmem:[#allocation5 + $0x50] sm:$0xff]  ;;  %v369_v41 = vld [vmem:[#allocation5 + $0x58] sm:$0xff]  ;;  %v370_v43 = vld [vmem:[#allocation5 + $0x60] sm:$0xff]  ;;  %v250_v49 = vrot.slane %v1456_v12, 1  ;;  %s1259_s23 = scalar_lea.vmem %s929_s18, 512  ;;  %p1264_p5 = scmp.lt.s32.totalorder %s929_s18, %s929_s18 }
  0x50   :  { %1091 = vmatprep.subr.bf16.mxu0 %v1090_v19  ;;  %v1102_v33 = vpack.c.bf16 %v365_v32, %v364_v31  ;;  %v1510_v34 = vsel %vm253_vm1, %v247_v29, %v248_v30  ;;  %v1106_v38 = vpack.c.bf16 %v367_v37, %v366_v36  ;;  %v1519_v39 = vsel %vm253_vm1, %v248_v30, %v249_v35  ;;  %v371_v44 = vld [vmem:[#allocation5 + $0x68] sm:$0xff]  ;;  %v372_v46 = vld [vmem:[#allocation5 + $0x70] sm:$0xff]  ;;  %v373_v47 = vld [vmem:[#allocation5 + $0x78] sm:$0xff]  ;;  %p1260_p4 = scmp.ne.s32.totalorder %s929_s18, %s1259_s23  ;;  %p1265_p6 = scmp.lt.s32.totalorder %s1259_s23, %s1259_s23 }
  0x51   :  { %1093 = vmatpush3.bf16.msra.mxu0 %v1090_v19  ;;  %v1110_v42 = vpack.c.bf16 %v369_v41, %v368_v40  ;;  %v1114_v45 = vpack.c.bf16 %v371_v44, %v370_v43  ;;  %v1118_v48 = vpack.c.bf16 %v373_v47, %v372_v46  ;;  %v1540_v50 = vsel %vm253_vm1, %v249_v35, %v250_v49  ;;  %v491_v56 = vld [vmem:[%s2014_s6 + $0x28] sm:$0xff]  ;;  %v486_v58 = vld [vmem:[%s2014_s6] sm:$0xff]  ;;  %v488_v60 = vld [vmem:[%s2014_s6 + $0x10] sm:$0xff] }
  0x52   :  { %1095 = vmatprep.subr.bf16.mxu0 %v1094_v23  ;;  %v251_v51 = vrot.slane %v1478_v16, 1  ;;  %v252_v53 = vrot.slane %v1422_v3, 1  ;;  %v487_v59 = vld [vmem:[%s2014_s6 + $0x8] sm:$0xff]  ;;  %v489_v61 = vld [vmem:[%s2014_s6 + $0x18] sm:$0xff]  ;;  %v490_v62 = vld [vmem:[%s2014_s6 + $0x20] sm:$0xff]  ;;  %p1266_p7 = por %p1265_p6, %p1264_p5 }
  0x53   :  { %105 = vrot.lane.b32.xlu0 %v1450_v10, %s1292_s14  ;;  %145 = vrot.lane.b32.xlu1 %v1450_v10, %s1295_s11  ;;  %v1596_v14 = vld [vmem:[#allocation2 + $0x1] ss:$0 sm:$0xff]  ;;  %v1598_v17 = vld [vmem:[#allocation2] ss:$0 sm:$0xff]  ;;  %v1603_v22 = vld [vmem:[#allocation2 + $0x2] ss:$0 sm:$0xff] }
  0x54   :  { %v1549_v52 = vsel %vm253_vm1, %v250_v49, %v251_v51  ;;  %v1562_v54 = vsel %vm253_vm1, %v251_v51, %v252_v53  ;;  %v1570_v55 = vsel %vm253_vm1, %v252_v53, %v247_v29  ;;  %v131_v19 = vmul.f32 %v1596_v14, %v1442_v9  ;;  %v1609_v32 = vld [vmem:[#allocation2 + $0x3] ss:$0 sm:$0xff]  ;;  %v1617_v40 = vld [vmem:[#allocation2 + $0x5] ss:$0 sm:$0xff]  ;;  %v1625_v49 = vld [vmem:[#allocation2 + $0x6] ss:$0 sm:$0xff]  ;;  %p1267_p8 = pnand %p1266_p7, %p1260_p4 }
  0x55   :  { %1097 = vmatpush3.bf16.msra.mxu0 %v1094_v23  ;;  %v132_v26 = vmul.f32 %v1596_v14, %v1450_v10  ;;  %v798_v1 = vld [vmem:[#allocation8 + $0x20] sm:$0xff] }
  0x56   :  { %1099 = vmatprep.subr.bf16.mxu0 %v1098_v28 }
  0x57   :  { %107 = vrot.lane.b32.xlu0 %v1464_v13, %s1292_s14  ;;  %174 = vrot.lane.b32.xlu1 %v1432_v6, %s1292_s14 }
  0x59   :  { %1101 = vmatpush3.bf16.msra.mxu0 %v1098_v28 }
  0x5a   :  { %1103 = vmatprep.subr.bf16.mxu0 %v1102_v33 }
  0x5b   :  { %109 = vrot.lane.b32.xlu0 %v1473_v15, %s1292_s14  ;;  %149 = vrot.lane.b32.xlu1 %v1473_v15, %s1295_s11 }
  0x5d   :  { %1105 = vmatpush3.bf16.msra.mxu0 %v1102_v33 }
  0x5e   :  { %1107 = vmatprep.subr.bf16.mxu0 %v1106_v38 }
  0x5f   :  { %147 = vrot.lane.b32.xlu0 %v1464_v13, %s1295_s11  ;;  %176 = vrot.lane.b32.xlu1 %v1438_v8, %s1292_s14 }
  0x61   :  { %1109 = vmatpush3.bf16.msra.mxu0 %v1106_v38  ;;  %v1614_v38 = vld [vmem:[#allocation2 + $0x4] ss:$0 sm:$0xff] }
  0x62   :  { %1111 = vmatprep.subr.bf16.mxu0 %v1110_v42  ;;  %v206_v44 = vmul.f32 %v1614_v38, %v1417_v2 }
  0x63   :  { %111 = vrot.lane.b32.xlu0 %v1491_v24, %s1292_s14  ;;  %113 = vrot.lane.b32.xlu1 %v1495_v25, %s1292_s14 }
  0x65   :  { %1113 = vmatpush3.bf16.msra.mxu0 %v1110_v42 }
  0x66   :  { %1115 = vmatprep.subr.bf16.mxu0 %v1114_v45 }
  0x67   :  { %218 = vrot.lane.b32.xlu0 %v1417_v2, %s1295_s11  ;;  %220 = vrot.lane.b32.xlu1 %v1432_v6, %s1295_s11 }
  0x69   :  { %1117 = vmatpush3.bf16.msra.mxu0 %v1114_v45 }
  0x6a   :  { %1119 = vmatprep.subr.bf16.mxu0 %v1118_v48 }
  0x6b   :  { %178 = vrot.lane.b32.xlu0 %v1456_v12, %s1292_s14  ;;  %260 = vrot.lane.b32.xlu1 %v1510_v34, %s1292_s14 }
  0x6d   :  { %1121 = vmatpush3.bf16.msra.mxu0 %v1118_v48  ;;  %v1623_v48 = vld [vmem:[#allocation2 + $0x7] ss:$0 sm:$0xff] }
  0x6f   :  { %151 = vrot.lane.b32.xlu0 %v1491_v24, %s1295_s11  ;;  %262 = vrot.lane.b32.xlu1 %v1519_v39, %s1292_s14 }
  0x73   :  { %153 = vrot.lane.b32.xlu0 %v1495_v25, %s1295_s11  ;;  %222 = vrot.lane.b32.xlu1 %v1438_v8, %s1295_s11 }
  0x77   :  { %180 = vrot.lane.b32.xlu0 %v1478_v16, %s1292_s14  ;;  %224 = vrot.lane.b32.xlu1 %v1456_v12, %s1295_s11 }
  0x7b   :  { %182 = vrot.lane.b32.xlu0 %v1422_v3, %s1292_s14  ;;  %306 = vrot.lane.b32.xlu1 %v1510_v34, %s1295_s11 }
  0x7f   :  { %264 = vrot.lane.b32.xlu0 %v1540_v50, %s1292_s14  ;;  %308 = vrot.lane.b32.xlu1 %v1519_v39, %s1295_s11 }
  0x83   :  { %266 = vrot.lane.b32.xlu0 %v1549_v52, %s1292_s14  ;;  %228 = vrot.lane.b32.xlu1 %v1422_v3, %s1295_s11 }
  0x87   :  { %226 = vrot.lane.b32.xlu0 %v1478_v16, %s1295_s11  ;;  %310 = vrot.lane.b32.xlu1 %v1540_v50, %s1295_s11 }
  0x8b   :  { %268 = vrot.lane.b32.xlu0 %v1562_v54, %s1292_s14  ;;  %312 = vrot.lane.b32.xlu1 %v1549_v52, %s1295_s11 }
  0x8f   :  { %270 = vrot.lane.b32.xlu0 %v1570_v55, %s1292_s14  ;;  %316 = vrot.lane.b32.xlu1 %v1570_v55, %s1295_s11 }
  0x93   :  { %314 = vrot.lane.b32.xlu0 %v1562_v54, %s1295_s11  ;;  %519 = vperm.xlu1 %1164, %v491_v56   ;;  %v207_v56 = vmul.f32 %v1614_v38, %v1432_v6  ;;  %v295_v6 = vmul.f32 %v1623_v48, %v1519_v39 }
  0x97   :  { %494 = vperm.xlu0 %1163, %v486_v58   ;;  %499 = vperm.xlu1 %1164, %v487_v59   ;;  %v294_v59 = vmul.f32 %v1623_v48, %v1510_v34 }
  0x9b   :  { %504 = vperm.xlu0 %1163, %v488_v60   ;;  %509 = vperm.xlu1 %1164, %v489_v61  }
  0x9f   :  { %514 = vperm.xlu0 %1163, %v490_v62   ;;  %v133_v62 = vmul.f32 %v1596_v14, %v1464_v13  ;;  %v134_v13 = vmul.f32 %v1596_v14, %v1473_v15 }
  0xbc   :  { %v173_v63 = vpop.permute.xlu1 %172 }
  0xbd   :  { %v189_v10 = vmul.f32 %v1609_v32, %v173_v63 }
  0xc1   :  { %v104_v0 = vpop.permute.xlu0 %103  ;;  %v144_v4 = vpop.permute.xlu1 %143 }
  0xc2   :  { %v120_v20 = vmul.f32 %v1598_v17, %v104_v0  ;;  %v160_v28 = vmul.f32 %v1603_v22, %v144_v4 }
  0xc4   :  { %v137_v27 = vadd.f32 %v131_v19, %v120_v20 }
  0xc5   :  { %v106_v5 = vpop.permute.xlu0 %105  ;;  %v146_v7 = vpop.permute.xlu1 %145 }
  0xc6   :  { %v121_v29 = vmul.f32 %v1598_v17, %v106_v5  ;;  %v166_v33 = vadd.f32 %v160_v28, %v137_v27  ;;  %v161_v35 = vmul.f32 %v1603_v22, %v146_v7 }
  0xc8   :  { %v138_v9 = vadd.f32 %v132_v26, %v121_v29  ;;  %v195_v41 = vadd.f32 %v189_v10, %v166_v33 }
  0xc9   :  { %v108_v11 = vpop.permute.xlu0 %107  ;;  %v175_v18 = vpop.permute.xlu1 %174 }
  0xca   :  { %v167_v42 = vadd.f32 %v161_v35, %v138_v9  ;;  %v190_v43 = vmul.f32 %v1609_v32, %v175_v18  ;;  %v212_v53 = vadd.f32 %v206_v44, %v195_v41  ;;  %v122_v63 = vmul.f32 %v1598_v17, %v108_v11 }
  0xcb   :  { %v208_v44 = vmul.f32 %v1614_v38, %v1438_v8  ;;  %v1660_v8 = vld [vmem:[%s2013_s5] ss:$0 sm:$0xff] }
  0xcc   :  { %v196_v51 = vadd.f32 %v190_v43, %v167_v42  ;;  %v139_v20 = vadd.f32 %v133_v62, %v122_v63 }
  0xcd   :  { %v110_v21 = vpop.permute.xlu0 %109  ;;  %v150_v23 = vpop.permute.xlu1 %149 }
  0xce   :  { %v213_v0 = vadd.f32 %v207_v56, %v196_v51  ;;  %v123_v11 = vmul.f32 %v1598_v17, %v110_v21  ;;  %v163_v41 = vmul.f32 %v1603_v22, %v150_v23 }
  0xd0   :  { %v140_v10 = vadd.f32 %v134_v13, %v123_v11 }
  0xd1   :  { %v148_v30 = vpop.permute.xlu0 %147  ;;  %v177_v31 = vpop.permute.xlu1 %176 }
  0xd2   :  { %v162_v26 = vmul.f32 %v1603_v22, %v148_v30  ;;  %v191_v35 = vmul.f32 %v1609_v32, %v177_v31  ;;  %v169_v21 = vadd.f32 %v163_v41, %v140_v10  ;;  %v135_v31 = vmul.f32 %v1596_v14, %v1491_v24 }
  0xd3   :  { %v296_v24 = vmul.f32 %v1623_v48, %v1540_v50 }
  0xd4   :  { %v168_v9 = vadd.f32 %v162_v26, %v139_v20 }
  0xd5   :  { %v112_v36 = vpop.permute.xlu0 %111  ;;  %v1612_v37 = vpop.permute.xlu1 %113 }
  0xd6   :  { %v197_v43 = vadd.f32 %v191_v35, %v168_v9  ;;  %v124_v51 = vmul.f32 %v1598_v17, %v112_v36 }
  0xd8   :  { %v214_v56 = vadd.f32 %v208_v44, %v197_v43  ;;  %v141_v63 = vadd.f32 %v135_v31, %v124_v51 }
  0xd9   :  { %v219_v45 = vpop.permute.xlu0 %218  ;;  %v221_v46 = vpop.permute.xlu1 %220 }
  0xda   :  { %v235_v47 = vmul.f32 %v1617_v40, %v219_v45  ;;  %v236_v2 = vmul.f32 %v1617_v40, %v221_v46  ;;  %v1648_v45 = vld [vmem:[#allocation2 + $0x8] ss:$0 sm:$0xff] }
  0xdc   :  { %v241_v60 = vadd.f32 %v235_v47, %v212_v53  ;;  %v242_v18 = vadd.f32 %v236_v2, %v213_v0 }
  0xdd   :  { %v179_v57 = vpop.permute.xlu0 %178  ;;  %v261_v58 = vpop.permute.xlu1 %260 }
  0xde   :  { %v277_v61 = vmul.f32 %v1625_v49, %v261_v58  ;;  %v192_v30 = vmul.f32 %v1609_v32, %v179_v57  ;;  %v209_v57 = vmul.f32 %v1614_v38, %v1456_v12  ;;  %v136_v12 = vmul.f32 %v1596_v14, %v1495_v25 }
  0xe0   :  { %v283_v4 = vadd.f32 %v277_v61, %v241_v60  ;;  %v198_v53 = vadd.f32 %v192_v30, %v169_v21 }
  0xe1   :  { %v152_v5 = vpop.permute.xlu0 %151  ;;  %v263_v7 = vpop.permute.xlu1 %262 }
  0xe2   :  { %v278_v34 = vmul.f32 %v1625_v49, %v263_v7  ;;  %v300_v19 = vadd.f32 %v294_v59, %v283_v4  ;;  %v164_v58 = vmul.f32 %v1603_v22, %v152_v5  ;;  %v125_v5 = vmul.f32 %v1598_v17, %v1612_v37 }
  0xe3   :  { %v215_v50 = vadd.f32 %v209_v57, %v198_v53 }
  0xe4   :  { %v284_v27 = vadd.f32 %v278_v34, %v242_v18  ;;  %v297_v18 = vmul.f32 %v1623_v48, %v1549_v52  ;;  %v170_v34 = vadd.f32 %v164_v58, %v141_v63  ;;  %v142_v9 = vadd.f32 %v136_v12, %v125_v5 }
  0xe5   :  { %v154_v28 = vpop.permute.xlu0 %153  ;;  %v223_v29 = vpop.permute.xlu1 %222 }
  0xe6   :  { %v301_v33 = vadd.f32 %v295_v6, %v284_v27  ;;  %v237_v46 = vmul.f32 %v1617_v40, %v223_v29  ;;  %v165_v25 = vmul.f32 %v1603_v22, %v154_v28  ;;  %v210_v29 = vmul.f32 %v1614_v38, %v1478_v16 }
  0xe7   :  { %v211_v16 = vmul.f32 %v1614_v38, %v1422_v3 }
  0xe8   :  { %v243_v36 = vadd.f32 %v237_v46, %v214_v56  ;;  %v171_v22 = vadd.f32 %v165_v25, %v142_v9 }
  0xe9   :  { %v181_v39 = vpop.permute.xlu0 %180  ;;  %v225_v42 = vpop.permute.xlu1 %224 }
  0xea   :  { %v238_v2 = vmul.f32 %v1617_v40, %v225_v42  ;;  %v193_v7 = vmul.f32 %v1609_v32, %v181_v39 }
  0xec   :  { %v244_v14 = vadd.f32 %v238_v2, %v215_v50  ;;  %v199_v35 = vadd.f32 %v193_v7, %v170_v34 }
  0xed   :  { %v183_v15 = vpop.permute.xlu0 %182  ;;  %v307_v47 = vpop.permute.xlu1 %306 }
  0xee   :  { %v323_v23 = vmul.f32 %v1648_v45, %v307_v47  ;;  %v194_v52 = vmul.f32 %v1609_v32, %v183_v15  ;;  %v216_v21 = vadd.f32 %v210_v29, %v199_v35  ;;  %v298_v32 = vmul.f32 %v1623_v48, %v1562_v54 }
  0xf0   :  { %v329_v59 = vadd.f32 %v323_v23, %v300_v19  ;;  %v200_v44 = vadd.f32 %v194_v52, %v171_v22 }
  0xf1   :  { %v265_v60 = vpop.permute.xlu0 %264  ;;  %v309_v62 = vpop.permute.xlu1 %308 }
  0xf2   :  { %v279_v61 = vmul.f32 %v1625_v49, %v265_v60  ;;  %v324_v0 = vmul.f32 %v1648_v45, %v309_v62  ;;  %v340_v4 = vadd.f32 %v1660_v8, %v329_v59  ;;  %v217_v57 = vadd.f32 %v211_v16, %v200_v44 }
  0xf3   :  { %v299_v60 = vmul.f32 %v1623_v48, %v1570_v55 }
  0xf4   :  { %v285_v6 = vadd.f32 %v279_v61, %v243_v36  ;;  %v330_v19 = vadd.f32 %v324_v0, %v301_v33  ;;  %v346_v26 = vmax.f32 %v340_v4, 0.0 }
  0xf5   :  { %v267_v20 = vpop.permute.xlu0 %266  ;;  %v229_v13 = vpop.permute.xlu1 %228 }
  0xf6   :  { %v280_v27 = vmul.f32 %v1625_v49, %v267_v20  ;;  %v302_v11 = vadd.f32 %v296_v24, %v285_v6  ;;  %v341_v17 = vadd.f32 %v1660_v8, %v330_v19  ;;  %v352_v37 = vmin.f32 %v346_v26, 6.0  ;;  %v952_v20 = vld [vmem:[%s2013_s5 + $0x1] ss:$0 sm:$0xff] }
  0xf7   :  { %v240_v15 = vmul.f32 %v1617_v40, %v229_v13 }
  0xf8   :  { %v286_v33 = vadd.f32 %v280_v27, %v244_v14  ;;  %1040 = vmatprep.mubr.f32.mxu0 %v352_v37  ;;  %v347_v10 = vmax.f32 %v341_v17, 0.0 }
  0xf9   :  { %v227_v39 = vpop.permute.xlu0 %226  ;;  %v311_v41 = vpop.permute.xlu1 %310  ;;  %v246_v24 = vadd.f32 %v240_v15, %v217_v57 }
  0xfa   :  { %v239_v28 = vmul.f32 %v1617_v40, %v227_v39  ;;  %v303_v42 = vadd.f32 %v297_v18, %v286_v33  ;;  %v325_v43 = vmul.f32 %v1648_v45, %v311_v41  ;;  %v353_v30 = vmin.f32 %v347_v10, 6.0 }
  0xfc   :  { %v331_v46 = vadd.f32 %v325_v43, %v302_v11  ;;  %1041 = vmatmul.mubr.f32.vlgmr.msra.gmra.mrb[0].mxu0 %v353_v30  ;;  %v245_v31 = vadd.f32 %v239_v28, %v216_v21 }
  0xfd   :  { %v269_v47 = vpop.permute.xlu0 %268  ;;  %v313_v23 = vpop.permute.xlu1 %312 }
  0xfe   :  { %v281_v51 = vmul.f32 %v1625_v49, %v269_v47  ;;  %v342_v53 = vadd.f32 %v1660_v8, %v331_v46  ;;  %v326_v56 = vmul.f32 %v1648_v45, %v313_v23 }
 0x100   :  { %v287_v58 = vadd.f32 %v281_v51, %v245_v31  ;;  %v332_v3 = vadd.f32 %v326_v56, %v303_v42  ;;  %v348_v59 = vmax.f32 %v342_v53, 0.0 }
 0x101   :  { %v271_v38 = vpop.permute.xlu0 %270  ;;  %v317_v40 = vpop.permute.xlu1 %316 }
 0x102   :  { %v282_v54 = vmul.f32 %v1625_v49, %v271_v38  ;;  %v304_v36 = vadd.f32 %v298_v32, %v287_v58  ;;  %v343_v2 = vadd.f32 %v1660_v8, %v332_v3  ;;  %v354_v61 = vmin.f32 %v348_v59, 6.0 }
 0x103   :  { %v328_v12 = vmul.f32 %v1648_v45, %v317_v40 }
 0x104   :  { %v288_v62 = vadd.f32 %v282_v54, %v246_v24  ;;  %1043 = vmatprep.mubr.f32.mxu0 %v354_v61  ;;  %v349_v0 = vmax.f32 %v343_v2, 0.0 }
 0x105   :  { %v315_v63 = vpop.permute.xlu0 %314 }
 0x106   :  { %v305_v4 = vadd.f32 %v299_v60, %v288_v62  ;;  %v327_v5 = vmul.f32 %v1648_v45, %v315_v63  ;;  %v355_v7 = vmin.f32 %v349_v0, 6.0 }
 0x108   :  { %v334_v50 = vadd.f32 %v328_v12, %v305_v4  ;;  %v333_v55 = vadd.f32 %v327_v5, %v304_v36  ;;  %1044 = vmatmul.mubr.f32.gmra.mrb[2].mxu0 %v355_v7 }
 0x10a   :  { %v345_v48 = vadd.f32 %v1660_v8, %v334_v50  ;;  %v344_v49 = vadd.f32 %v1660_v8, %v333_v55 }
 0x10c   :  { %v350_v6 = vmax.f32 %v344_v49, 0.0  ;;  %v351_v18 = vmax.f32 %v345_v48, 0.0 }
 0x10e   :  { %v356_v34 = vmin.f32 %v350_v6, 6.0  ;;  %v357_v19 = vmin.f32 %v351_v18, 6.0 }
 0x110   :  { %1046 = vmatprep.mubr.f32.mxu0 %v356_v34  ;;  %v794_v34 = vld [vmem:[#allocation8] sm:$0xff] }
 0x111   :  { %1047 = vmatmul.mubr.f32.gmra.mrb[4].mxu0 %v357_v19  ;;  %v795_v19 = vld [vmem:[#allocation8 + $0x8] sm:$0xff] }
 0x112   :  { %v520_v26 = vpop.permute.xlu1 %519 }
 0x116   :  { %v500_v17 = vpop.permute.xlu1 %499  ;;  %v495_v8 = vpop.permute.xlu0 %494 }
 0x11a   :  { %v510_v46 = vpop.permute.xlu1 %509  ;;  %v505_v32 = vpop.permute.xlu0 %504 }
 0x11e   :  { %v515_v62 = vpop.permute.xlu0 %514 }
 0x1cf   :  { %v1042_v45 = vpop.f32.mrb[0].mxu0 }
 0x1d0   :  { %v451_v25 = vadd.f32 %v1042_v45, %v952_v20  ;;  %v445_v14 = vpop.f32.mrb[1].mxu0  ;;  %v797_v45 = vld [vmem:[#allocation8 + $0x18] sm:$0xff] }
 0x1d1   :  { %v446_v27 = vadd.f32 %v952_v20, %v445_v14  ;;  %v799_v14 = vld [vmem:[#allocation8 + $0x28] sm:$0xff] }
 0x1d2   :  { %v475_v13 = vmax.f32 %v451_v25, 0.0 }
 0x1d3   :  { %v474_v11 = vmax.f32 %v446_v27, 0.0  ;;  %v1130_v27 = vpack.c.bf16 %v799_v14, %v798_v1 }
 0x1d4   :  { %v481_v37 = vmin.f32 %v475_v13, 6.0  ;;  %v800_v13 = vld [vmem:[#allocation8 + $0x30] sm:$0xff] }
 0x1d5   :  { %v480_v29 = vmin.f32 %v474_v11, 6.0  ;;  %v801_v11 = vld [vmem:[#allocation8 + $0x38] sm:$0xff] }
 0x1d6   :  { %v1703_v9 = vmul.f32 %v500_v17, %v481_v37  ;;  %v1134_v17 = vpack.c.bf16 %v801_v11, %v800_v13  ;;  %v802_v37 = vld [vmem:[#allocation8 + $0x40] sm:$0xff] }
 0x1d7   :  { %v1705_v35 = vmul.f32 %v495_v8, %v480_v29  ;;  %v803_v8 = vld [vmem:[#allocation8 + $0x48] sm:$0xff] }
 0x1d8   :  { %611 = vrot.lane.b32.xlu0 %v1703_v9, %s1292_s14  ;;  %v529_v52 = vrot.slane %v1703_v9, 7  ;;  %v685_v33 = vrot.slane %v1703_v9, 1  ;;  %v1138_v29 = vpack.c.bf16 %v803_v8, %v802_v37 }
 0x1d9   :  { %655 = vrot.lane.b32.xlu1 %v1705_v35, %s1295_s11  ;;  %v528_v39 = vrot.slane %v1705_v35, 7  ;;  %v684_v10 = vrot.slane %v1705_v35, 1 }
 0x1db   :  { %v1045_v22 = vpop.f32.mrb[2].mxu0  ;;  %v1717_v28 = vsel %vm96_vm0, %v528_v39, %v529_v52  ;;  %v1721_v41 = vsel %vm253_vm1, %v684_v10, %v685_v33 }
 0x1dc   :  { %v461_v42 = vadd.f32 %v1045_v22, %v952_v20  ;;  %657 = vrot.lane.b32.xlu0 %v1703_v9, %s1295_s11  ;;  %v455_v43 = vpop.f32.mrb[3].mxu0  ;;  %v807_v22 = vld [vmem:[#allocation8 + $0x68] sm:$0xff] }
 0x1dd   :  { %v456_v30 = vadd.f32 %v952_v20, %v455_v43  ;;  %v808_v43 = vld [vmem:[#allocation8 + $0x70] sm:$0xff] }
 0x1de   :  { %v477_v44 = vmax.f32 %v461_v42, 0.0 }
 0x1df   :  { %v476_v16 = vmax.f32 %v456_v30, 0.0  ;;  %v809_v30 = vld [vmem:[#allocation8 + $0x78] sm:$0xff] }
 0x1e0   :  { %v483_v21 = vmin.f32 %v477_v44, 6.0  ;;  %609 = vrot.lane.b32.xlu0 %v1705_v35, %s1292_s14  ;;  %v1150_v44 = vpack.c.bf16 %v809_v30, %v808_v43 }
 0x1e1   :  { %v482_v47 = vmin.f32 %v476_v16, 6.0 }
 0x1e2   :  { %v1727_v15 = vmul.f32 %v510_v46, %v483_v21 }
 0x1e3   :  { %v1729_v31 = vmul.f32 %v505_v32, %v482_v47  ;;  %v1851_v32 = vld [vmem:[#allocation7] ss:$0 sm:$0xff] }
 0x1e4   :  { %v1048_v51 = vpop.f32.mrb[4].mxu0  ;;  %615 = vrot.lane.b32.xlu1 %v1727_v15, %s1292_s14  ;;  %542 = vrot.lane.b32.xlu0 %v1717_v28, %s1292_s14  ;;  %v531_v56 = vrot.slane %v1727_v15, 7  ;;  %v687_v57 = vrot.slane %v1727_v15, 1 }
 0x1e5   :  { %v471_v23 = vadd.f32 %v1048_v51, %v952_v20  ;;  %v465_v53 = vpop.f32.mrb[5].mxu0  ;;  %v530_v3 = vrot.slane %v1729_v31, 7  ;;  %v686_v38 = vrot.slane %v1729_v31, 1  ;;  %v1853_v51 = vld [vmem:[#allocation7 + $0x1] ss:$0 sm:$0xff] }
 0x1e6   :  { %v466_v58 = vadd.f32 %v952_v20, %v465_v53  ;;  %v1122_v20 = vpack.c.bf16 %v795_v19, %v794_v34 }
 0x1e7   :  { %v479_v59 = vmax.f32 %v471_v23, 0.0  ;;  %v1741_v24 = vsel %vm96_vm0, %v529_v52, %v530_v3  ;;  %v1745_v54 = vsel %vm96_vm0, %v530_v3, %v531_v56  ;;  %v1749_v40 = vsel %vm253_vm1, %v686_v38, %v687_v57  ;;  %v804_v52 = vld [vmem:[#allocation8 + $0x50] sm:$0xff] }
 0x1e8   :  { %v478_v60 = vmax.f32 %v466_v58, 0.0  ;;  %544 = vrot.lane.b32.xlu1 %v1741_v24, %s1292_s14  ;;  %582 = vrot.lane.b32.xlu0 %v1717_v28, %s1295_s11  ;;  %v1757_v61 = vsel %vm253_vm1, %v685_v33, %v686_v38  ;;  %v805_v33 = vld [vmem:[#allocation8 + $0x58] sm:$0xff]  ;;  %v569_v58 = vmul.f32 %v1853_v51, %v1717_v28  ;;  %v1860_v3 = vld [vmem:[#allocation7 + $0x3] ss:$0 sm:$0xff]  ;;  %v570_v1 = vmul.f32 %v1853_v51, %v1741_v24 }
 0x1e9   :  { %v485_v36 = vmin.f32 %v479_v59, 6.0  ;;  %1123 = vmatprep.subr.bf16.mxu1 %v1122_v20 }
 0x1ea   :  { %v484_v2 = vmin.f32 %v478_v60, 6.0  ;;  %1125 = vmatpush3.bf16.msra.mxu1 %v1122_v20 }
 0x1eb   :  { %v1759_v12 = vmul.f32 %v520_v26, %v485_v36  ;;  %v796_v26 = vld [vmem:[#allocation8 + $0x10] sm:$0xff] }
 0x1ec   :  { %v1761_v63 = vmul.f32 %v515_v62, %v484_v2  ;;  %546 = vrot.lane.b32.xlu1 %v1745_v54, %s1292_s14  ;;  %696 = vrot.lane.b32.xlu0 %v1721_v41, %s1292_s14  ;;  %v1126_v25 = vpack.c.bf16 %v797_v45, %v796_v26  ;;  %v1863_v2 = vld [vmem:[#allocation7 + $0x4] ss:$0 sm:$0xff] }
 0x1ed   :  { %v533_v0 = vrot.slane %v1759_v12, 7  ;;  %v689_v4 = vrot.slane %v1759_v12, 1  ;;  %v644_v34 = vmul.f32 %v1863_v2, %v1703_v9  ;;  %v645_v8 = vmul.f32 %v1863_v2, %v1729_v31 }
 0x1ee   :  { %v532_v5 = vrot.slane %v1761_v63, 7  ;;  %v688_v7 = vrot.slane %v1761_v63, 1  ;;  %1127 = vmatprep.subr.bf16.mxu1 %v1126_v25 }
 0x1ef   :  { %v1773_v50 = vsel %vm96_vm0, %v533_v0, %v528_v39  ;;  %v1777_v55 = vsel %vm253_vm1, %v689_v4, %v684_v10  ;;  %1129 = vmatpush3.bf16.msra.mxu1 %v1126_v25  ;;  %v1142_v39 = vpack.c.bf16 %v805_v33, %v804_v52  ;;  %v806_v10 = vld [vmem:[#allocation8 + $0x60] sm:$0xff] }
 0x1f0   :  { %v1781_v48 = vsel %vm96_vm0, %v531_v56, %v532_v5  ;;  %v1785_v49 = vsel %vm96_vm0, %v532_v5, %v533_v0  ;;  %584 = vrot.lane.b32.xlu1 %v1741_v24, %s1295_s11  ;;  %661 = vrot.lane.b32.xlu0 %v1727_v15, %s1295_s11  ;;  %v1793_v6 = vsel %vm253_vm1, %v687_v57, %v688_v7  ;;  %v1856_v57 = vld [vmem:[#allocation7 + $0x2] ss:$0 sm:$0xff] }
 0x1f1   :  { %v1797_v18 = vsel %vm253_vm1, %v688_v7, %v689_v4  ;;  %1131 = vmatprep.subr.bf16.mxu1 %v1130_v27  ;;  %v1146_v42 = vpack.c.bf16 %v807_v22, %v806_v10  ;;  %v1889_v22 = vld [vmem:[#allocation7 + $0x6] ss:$0 sm:$0xff] }
 0x1f3   :  { %1133 = vmatpush3.bf16.msra.mxu1 %v1130_v27 }
 0x1f4   :  { %619 = vrot.lane.b32.xlu1 %v1759_v12, %s1292_s14  ;;  %742 = vrot.lane.b32.xlu0 %v1721_v41, %s1295_s11 }
 0x1f5   :  { %1135 = vmatprep.subr.bf16.mxu1 %v1134_v17 }
 0x1f7   :  { %1137 = vmatpush3.bf16.msra.mxu1 %v1134_v17 }
 0x1f8   :  { %700 = vrot.lane.b32.xlu1 %v1749_v40, %s1292_s14  ;;  %613 = vrot.lane.b32.xlu0 %v1729_v31, %s1292_s14 }
 0x1f9   :  { %1139 = vmatprep.subr.bf16.mxu1 %v1138_v29 }
 0x1fb   :  { %1141 = vmatpush3.bf16.msra.mxu1 %v1138_v29  ;;  %v1883_v29 = vld [vmem:[#allocation7 + $0x5] ss:$0 sm:$0xff] }
 0x1fc   :  { %617 = vrot.lane.b32.xlu1 %v1761_v63, %s1292_s14  ;;  %659 = vrot.lane.b32.xlu0 %v1729_v31, %s1295_s11 }
 0x1fd   :  { %1143 = vmatprep.subr.bf16.mxu1 %v1142_v39 }
 0x1ff   :  { %1145 = vmatpush3.bf16.msra.mxu1 %v1142_v39 }
 0x200   :  { %663 = vrot.lane.b32.xlu1 %v1761_v63, %s1295_s11  ;;  %586 = vrot.lane.b32.xlu0 %v1745_v54, %s1295_s11 }
 0x201   :  { %1147 = vmatprep.subr.bf16.mxu1 %v1146_v42 }
 0x203   :  { %1149 = vmatpush3.bf16.msra.mxu1 %v1146_v42  ;;  %v571_v42 = vmul.f32 %v1853_v51, %v1745_v54 }
 0x204   :  { %540 = vrot.lane.b32.xlu1 %v1773_v50, %s1292_s14  ;;  %698 = vrot.lane.b32.xlu0 %v1757_v61, %s1292_s14 }
 0x205   :  { %1151 = vmatprep.subr.bf16.mxu1 %v1150_v44 }
 0x207   :  { %1153 = vmatpush3.bf16.msra.mxu1 %v1150_v44  ;;  %v1894_v44 = vld [vmem:[#allocation7 + $0x7] ss:$0 sm:$0xff] }
 0x208   :  { %580 = vrot.lane.b32.xlu1 %v1773_v50, %s1295_s11  ;;  %744 = vrot.lane.b32.xlu0 %v1757_v61, %s1295_s11 }
 0x20c   :  { %548 = vrot.lane.b32.xlu1 %v1781_v48, %s1292_s14  ;;  %550 = vrot.lane.b32.xlu0 %v1785_v49, %s1292_s14 }
 0x210   :  { %706 = vrot.lane.b32.xlu1 %v1777_v55, %s1292_s14  ;;  %665 = vrot.lane.b32.xlu0 %v1759_v12, %s1295_s11 }
 0x214   :  { %588 = vrot.lane.b32.xlu1 %v1781_v48, %s1295_s11  ;;  %746 = vrot.lane.b32.xlu0 %v1749_v40, %s1295_s11 }
 0x218   :  { %590 = vrot.lane.b32.xlu1 %v1785_v49, %s1295_s11  ;;  %748 = vrot.lane.b32.xlu0 %v1793_v6, %s1295_s11 }
 0x21c   :  { %702 = vrot.lane.b32.xlu1 %v1793_v6, %s1292_s14  ;;  %752 = vrot.lane.b32.xlu0 %v1777_v55, %s1295_s11 }
 0x220   :  { %704 = vrot.lane.b32.xlu1 %v1797_v18, %s1292_s14 }
 0x224   :  { %750 = vrot.lane.b32.xlu1 %v1797_v18, %s1295_s11 }
 0x24a   :  { %v612_v16 = vpop.permute.xlu0 %611 }
 0x24b   :  { %v1847_v46 = vpop.permute.xlu1 %655  ;;  %v627_v62 = vmul.f32 %v1860_v3, %v612_v16 }
 0x24e   :  { %v658_v21 = vpop.permute.xlu0 %657 }
 0x252   :  { %v1849_v47 = vpop.permute.xlu0 %609 }
 0x256   :  { %v616_v23 = vpop.permute.xlu1 %615  ;;  %v543_v53 = vpop.permute.xlu0 %542 }
 0x257   :  { %v558_v56 = vmul.f32 %v1851_v32, %v543_v53  ;;  %v732_v53 = vmul.f32 %v1894_v44, %v1749_v40 }
 0x259   :  { %v575_v60 = vadd.f32 %v569_v58, %v558_v56 }
 0x25a   :  { %v545_v38 = vpop.permute.xlu1 %544  ;;  %v583_v59 = vpop.permute.xlu0 %582 }
 0x25b   :  { %v598_v36 = vmul.f32 %v1856_v57, %v583_v59  ;;  %v559_v26 = vmul.f32 %v1851_v32, %v545_v38  ;;  %v673_v59 = vmul.f32 %v1883_v29, %v658_v21  ;;  %v731_v21 = vmul.f32 %v1894_v44, %v1757_v61 }
 0x25c   :  { %v672_v61 = vmul.f32 %v1883_v29, %v1847_v46 }
 0x25d   :  { %v604_v0 = vadd.f32 %v598_v36, %v575_v60  ;;  %v576_v27 = vadd.f32 %v570_v1, %v559_v26  ;;  %v629_v60 = vmul.f32 %v1860_v3, %v616_v23  ;;  %v568_v26 = vmul.f32 %v1853_v51, %v1773_v50 }
 0x25e   :  { %v547_v4 = vpop.permute.xlu1 %546  ;;  %v1866_v5 = vpop.permute.xlu0 %696  ;;  %v643_v50 = vmul.f32 %v1863_v2, %v1705_v35  ;;  %v730_v35 = vmul.f32 %v1894_v44, %v1721_v41 }
 0x25f   :  { %v633_v7 = vadd.f32 %v627_v62, %v604_v0  ;;  %v560_v39 = vmul.f32 %v1851_v32, %v547_v4  ;;  %v646_v4 = vmul.f32 %v1863_v2, %v1727_v15 }
 0x261   :  { %v650_v28 = vadd.f32 %v644_v34, %v633_v7  ;;  %v577_v56 = vadd.f32 %v571_v42, %v560_v39 }
 0x262   :  { %v585_v19 = vpop.permute.xlu1 %584  ;;  %v1870_v20 = vpop.permute.xlu0 %661 }
 0x263   :  { %v599_v14 = vmul.f32 %v1856_v57, %v585_v19  ;;  %v679_v19 = vadd.f32 %v673_v59, %v650_v28 }
 0x265   :  { %v605_v17 = vadd.f32 %v599_v14, %v576_v27 }
 0x266   :  { %v1873_v45 = vpop.permute.xlu1 %619  ;;  %v1875_v25 = vpop.permute.xlu0 %742 }
 0x26a   :  { %v701_v13 = vpop.permute.xlu1 %700  ;;  %v614_v11 = vpop.permute.xlu0 %613 }
 0x26b   :  { %v628_v9 = vmul.f32 %v1860_v3, %v614_v11  ;;  %v715_v43 = vmul.f32 %v1889_v22, %v701_v13 }
 0x26d   :  { %v634_v37 = vadd.f32 %v628_v9, %v605_v17  ;;  %v626_v17 = vmul.f32 %v1860_v3, %v1849_v47  ;;  %v713_v47 = vmul.f32 %v1889_v22, %v1866_v5 }
 0x26e   :  { %v1885_v52 = vpop.permute.xlu1 %617  ;;  %v660_v33 = vpop.permute.xlu0 %659 }
 0x26f   :  { %v651_v24 = vadd.f32 %v645_v8, %v634_v37  ;;  %v674_v10 = vmul.f32 %v1883_v29, %v660_v33  ;;  %v1916_v33 = vld [vmem:[#allocation7 + $0x8] ss:$0 sm:$0xff] }
 0x270   :  { %v759_v46 = vmul.f32 %v1916_v33, %v1875_v25  ;;  %v630_v25 = vmul.f32 %v1860_v3, %v1885_v52  ;;  %v631_v52 = vmul.f32 %v1860_v3, %v1873_v45 }
 0x271   :  { %v680_v30 = vadd.f32 %v674_v10, %v651_v24 }
 0x272   :  { %v1896_v31 = vpop.permute.xlu1 %663  ;;  %v587_v16 = vpop.permute.xlu0 %586 }
 0x273   :  { %v721_v58 = vadd.f32 %v715_v43, %v680_v30  ;;  %v600_v38 = vmul.f32 %v1856_v57, %v587_v16  ;;  %v572_v16 = vmul.f32 %v1853_v51, %v1781_v48  ;;  %v676_v3 = vmul.f32 %v1883_v29, %v1896_v31 }
 0x274   :  { %v734_v31 = vmul.f32 %v1894_v44, %v1797_v18 }
 0x275   :  { %v606_v54 = vadd.f32 %v600_v38, %v577_v56  ;;  %v738_v36 = vadd.f32 %v732_v53, %v721_v58  ;;  %v1933_v58 = vld [vmem:[%s2013_s5 + $0x2] ss:$0 sm:$0xff] }
 0x276   :  { %v541_v62 = vpop.permute.xlu1 %540  ;;  %v699_v0 = vpop.permute.xlu0 %698 }
 0x277   :  { %v635_v7 = vadd.f32 %v629_v60, %v606_v54  ;;  %v557_v34 = vmul.f32 %v1851_v32, %v541_v62  ;;  %v714_v40 = vmul.f32 %v1889_v22, %v699_v0  ;;  %v573_v62 = vmul.f32 %v1853_v51, %v1785_v49 }
 0x278   :  { %v675_v49 = vmul.f32 %v1883_v29, %v1870_v20  ;;  %v733_v20 = vmul.f32 %v1894_v44, %v1793_v6 }
 0x279   :  { %v720_v23 = vadd.f32 %v714_v40, %v679_v19  ;;  %v652_v1 = vadd.f32 %v646_v4, %v635_v7  ;;  %v574_v13 = vadd.f32 %v568_v26, %v557_v34  ;;  %v647_v19 = vmul.f32 %v1863_v2, %v1761_v63 }
 0x27a   :  { %v581_v14 = vpop.permute.xlu1 %580  ;;  %v745_v27 = vpop.permute.xlu0 %744 }
 0x27b   :  { %v597_v11 = vmul.f32 %v1856_v57, %v581_v14  ;;  %v737_v15 = vadd.f32 %v731_v21, %v720_v23  ;;  %v760_v24 = vmul.f32 %v1916_v33, %v745_v27 }
 0x27d   :  { %v603_v28 = vadd.f32 %v597_v11, %v574_v13  ;;  %v766_v53 = vadd.f32 %v760_v24, %v737_v15 }
 0x27e   :  { %v549_v9 = vpop.permute.xlu1 %548  ;;  %v551_v37 = vpop.permute.xlu0 %550 }
 0x27f   :  { %v632_v8 = vadd.f32 %v626_v17, %v603_v28  ;;  %v561_v30 = vmul.f32 %v1851_v32, %v549_v9  ;;  %v562_v5 = vmul.f32 %v1851_v32, %v551_v37  ;;  %v777_v0 = vadd.f32 %v1933_v58, %v766_v53 }
 0x280   :  { %v648_v17 = vmul.f32 %v1863_v2, %v1759_v12 }
 0x281   :  { %v649_v39 = vadd.f32 %v643_v50, %v632_v8  ;;  %v578_v60 = vadd.f32 %v572_v16, %v561_v30  ;;  %v579_v40 = vadd.f32 %v573_v62, %v562_v5  ;;  %v783_v13 = vmax.f32 %v777_v0, 0.0 }
 0x282   :  { %v707_v10 = vpop.permute.xlu1 %706  ;;  %v666_v42 = vpop.permute.xlu0 %665 }
 0x283   :  { %v678_v43 = vadd.f32 %v672_v61, %v649_v39  ;;  %v677_v37 = vmul.f32 %v1883_v29, %v666_v42  ;;  %v789_v61 = vmin.f32 %v783_v13, 6.0  ;;  %v718_v39 = vmul.f32 %v1889_v22, %v707_v10 }
 0x284   :  { %v735_v29 = vmul.f32 %v1894_v44, %v1777_v55 }
 0x285   :  { %v719_v56 = vadd.f32 %v713_v47, %v678_v43 }
 0x286   :  { %v589_v38 = vpop.permute.xlu1 %588  ;;  %v747_v59 = vpop.permute.xlu0 %746 }
 0x287   :  { %v601_v41 = vmul.f32 %v1856_v57, %v589_v38  ;;  %v761_v54 = vmul.f32 %v1916_v33, %v747_v59  ;;  %v736_v48 = vadd.f32 %v730_v35, %v719_v56 }
 0x289   :  { %v607_v4 = vadd.f32 %v601_v41, %v578_v60  ;;  %v767_v7 = vadd.f32 %v761_v54, %v738_v36  ;;  %v765_v34 = vadd.f32 %v759_v46, %v736_v48 }
 0x28a   :  { %v591_v32 = vpop.permute.xlu1 %590  ;;  %v749_v14 = vpop.permute.xlu0 %748 }
 0x28b   :  { %v636_v26 = vadd.f32 %v630_v25, %v607_v4  ;;  %v778_v21 = vadd.f32 %v1933_v58, %v767_v7  ;;  %v602_v23 = vmul.f32 %v1856_v57, %v591_v32  ;;  %v776_v51 = vadd.f32 %v1933_v58, %v765_v34  ;;  %v1166_v32 = vld [vmem:[%s2008_s0] sm:$0xff] }
 0x28c   :  { %v681_v57 = vadd.f32 %v675_v49, %v652_v1  ;;  %v762_v12 = vmul.f32 %v1916_v33, %v749_v14  ;;  %v1167_v49 = vld [vmem:[%s2008_s0 + $0x18] sm:$0xff] }
 0x28d   :  { %v608_v36 = vadd.f32 %v602_v23, %v579_v40  ;;  %v653_v27 = vadd.f32 %v647_v19, %v636_v26  ;;  %v782_v63 = vmax.f32 %v776_v51, 0.0  ;;  %v784_v15 = vmax.f32 %v778_v21, 0.0 }
 0x28e   :  { %v703_v11 = vpop.permute.xlu1 %702  ;;  %v753_v43 = vpop.permute.xlu0 %752 }
 0x28f   :  { %v637_v28 = vadd.f32 %v631_v52, %v608_v36  ;;  %v716_v9 = vmul.f32 %v1889_v22, %v703_v11  ;;  %v788_v45 = vmin.f32 %v782_v63, 6.0  ;;  %v790_v1 = vmin.f32 %v784_v15, 6.0  ;;  %v1168_v52 = vld [vmem:[%s2008_s0 + $0x10] sm:$0xff]  ;;  %v1169_v63 = vld [vmem:[%s2008_s0 + $0x28] sm:$0xff] }
 0x290   :  { %v682_v6 = vadd.f32 %v676_v3, %v653_v27  ;;  %v764_v16 = vmul.f32 %v1916_v33, %v753_v43 }
 0x291   :  { %v654_v50 = vadd.f32 %v648_v17, %v637_v28  ;;  %v722_v8 = vadd.f32 %v716_v9, %v681_v57  ;;  %1081 = vmatprep.mubr.f32.mxu1 %v788_v45  ;;  %v1170_v17 = vld [vmem:[%s2008_s0 + $0x20] sm:$0xff] }
 0x292   :  { %v705_v2 = vpop.permute.xlu1 %704  ;;  %1082 = vmatmul.mubr.f32.vlgmr.msra.gmra.mrb[0].mxu1 %v789_v61 }
 0x293   :  { %v739_v24 = vadd.f32 %v733_v20, %v722_v8  ;;  %v683_v47 = vadd.f32 %v677_v37, %v654_v50  ;;  %v717_v30 = vmul.f32 %v1889_v22, %v705_v2  ;;  %1084 = vmatprep.mubr.f32.mxu1 %v790_v1 }
 0x295   :  { %v768_v10 = vadd.f32 %v762_v12, %v739_v24  ;;  %v724_v42 = vadd.f32 %v718_v39, %v683_v47  ;;  %v723_v35 = vadd.f32 %v717_v30, %v682_v6 }
 0x296   :  { %v751_v53 = vpop.permute.xlu1 %750 }
 0x297   :  { %v741_v56 = vadd.f32 %v735_v29, %v724_v42  ;;  %v740_v46 = vadd.f32 %v734_v31, %v723_v35  ;;  %v763_v5 = vmul.f32 %v1916_v33, %v751_v53  ;;  %v779_v22 = vadd.f32 %v1933_v58, %v768_v10  ;;  %v963_v33 = vld [vmem:[%s2013_s5 + $0x3] ss:$0 sm:$0xff] }
 0x299   :  { %v770_v38 = vadd.f32 %v764_v16, %v741_v56  ;;  %v769_v59 = vadd.f32 %v763_v5, %v740_v46  ;;  %v785_v60 = vmax.f32 %v779_v22, 0.0 }
 0x29b   :  { %v781_v55 = vadd.f32 %v1933_v58, %v770_v38  ;;  %v780_v41 = vadd.f32 %v1933_v58, %v769_v59  ;;  %v791_v18 = vmin.f32 %v785_v60, 6.0  ;;  %v1165_v58 = vld [vmem:[%s2008_s0 + $0x8] sm:$0xff] }
 0x29d   :  { %1085 = vmatmul.mubr.f32.gmra.mrb[2].mxu1 %v791_v18  ;;  %v786_v44 = vmax.f32 %v780_v41, 0.0  ;;  %v787_v54 = vmax.f32 %v781_v55, 0.0 }
 0x29f   :  { %v792_v48 = vmin.f32 %v786_v44, 6.0  ;;  %v793_v62 = vmin.f32 %v787_v54, 6.0 }
 0x2a1   :  { %1087 = vmatprep.mubr.f32.mxu1 %v792_v48 }
 0x2a2   :  { %1088 = vmatmul.mubr.f32.gmra.mrb[4].mxu1 %v793_v62 }
 0x365   :  { %v1083_v25 = vpop.f32.mrb[0].mxu1 }
 0x366   :  { %v887_v0 = vadd.f32 %v1083_v25, %v963_v33  ;;  %v881_v4 = vpop.f32.mrb[1].mxu1 }
 0x367   :  { %v882_v7 = vadd.f32 %v963_v33, %v881_v4 }
 0x368   :  { %v911_v34 = vadd.f32 %v1165_v58, %v887_v0 }
 0x369   :  { %v910_v19 = vadd.f32 %v1166_v32, %v882_v7 }
 0x36a   :  { %917 = vst [vmem:[#allocation10 + $0x6] sm:$0xff] %v911_v34 }
 0x36b   :  { %916 = vst [vmem:[#allocation10 - $0x2] sm:$0xfc] %v910_v19 }
 0x370   :  { %v1086_v40 = vpop.f32.mrb[2].mxu1 }
 0x371   :  { %v897_v26 = vadd.f32 %v1086_v40, %v963_v33  ;;  %v891_v21 = vpop.f32.mrb[3].mxu1 }
 0x372   :  { %v892_v23 = vadd.f32 %v963_v33, %v891_v21 }
 0x373   :  { %v913_v51 = vadd.f32 %v1167_v49, %v897_v26 }
 0x374   :  { %v912_v36 = vadd.f32 %v1168_v52, %v892_v23 }
 0x375   :  { %920 = vst [vmem:[#allocation10 + $0xe] sm:$0xfc] %v913_v51  ;;  %v1089_v14 = vpop.f32.mrb[4].mxu1 }
 0x376   :  { %918 = vst [vmem:[#allocation10 + $0xe] sm:$0x3] %v912_v36  ;;  %v907_v27 = vadd.f32 %v1089_v14, %v963_v33  ;;  %v901_v13 = vpop.f32.mrb[5].mxu1 }
 0x377   :  { %v902_v11 = vadd.f32 %v963_v33, %v901_v13 }
 0x378   :  { %v915_v15 = vadd.f32 %v1169_v63, %v907_v27 }
 0x379   :  { %v914_v28 = vadd.f32 %v1170_v17, %v902_v11 }
 0x37a   :  { %922 = vst [vmem:[#allocation10 + $0x1e] sm:$0x3] %v915_v15 }
 0x37b   :  { %921 = vst [vmem:[#allocation10 + $0x16] sm:$0xff] %v914_v28 }
 0x37c   :  { %1270 = shalt.err (!%p1267_p8)
}
 0x37d   :  { %s1271_s3 = scalar_lea.hbm %s2015_s7, 512 }
 0x37e   :  { %p1272_p9 = scmp.ne.s32.totalorder %s2015_s7, %s1271_s3  ;;  %p1275_p10 = scmp.lt.u32.totalorder %s1271_s3, %s2015_s7 }
 0x380   :  { %p1277_p11 = pnand %p1275_p10, %p1272_p9 }
 0x382   :  { %1280 = shalt.err (!%p1277_p11)
}
 0x383   :  { %934 = dma.vmem_to_hbm [thread:$0]  %s929_s18, 512, %s2015_s7, [#allocation4], %s1291_s13, %s1291_s13, %s1292_s14  }
 0x384   :  { %1287 = dma.done.wait [#allocation4], 512  }
 0x385   :  { %1288 = vsyncadd [#allocation4], 4294966784 }
 0x386   :  { %938 = vsyncpa [#allocation3], 1 }
 0x387   :  { %939 = vsyncpa [#allocation6], 1 }
 0x388   :  { %940 = vsyncpa [#allocation9], 1 }
 0x389   :  { %941 = vsyncpa [#allocation4], 1 }

</bundles_post_ra>
